<compile_context>
chip_gen: v7x
topology: tpu7x:2x2x1
jax: 0.10.0
libtpu: 0.0.40
codegen_flags: <defaults>
</compile_context>

<pallas_src>
import math
from functools import partial

import jax
import jax.numpy as jnp
from jax.experimental import pallas as pl
from jax.experimental.pallas import tpu as pltpu

EPS = 1e-5  # torch.nn.LayerNorm default


def _layernorm(x, g, b):
    mu = jnp.mean(x, axis=-1, keepdims=True)
    var = jnp.mean((x - mu) ** 2, axis=-1, keepdims=True)
    return (x - mu) * jax.lax.rsqrt(var + EPS) * g + b


def _gelu(x):
    # exact (erf-based) GELU, matching torch.nn.GELU() default
    return 0.5 * x * (1.0 + jax.lax.erf(x * jnp.float32(1.0 / math.sqrt(2.0))))


# ---------------------------------------------------------------------------
# Fused transformer block kernel on a (Bt, Lp, C) batch tile
#   out = y + MLP(LN2(y)),  y = x + MHA(LN1(x))
# When fuse_head=True the kernel additionally applies the read-head Linear and
# emits ONLY the (Bt, Lp, DCp) logits (residual stream not written to HBM).
# ---------------------------------------------------------------------------
def block_kernel(H, dh, L_real, fuse_head, *refs):
    (x_ref, g1_ref, b1_ref, wqkv_ref, bqkv_ref, wo_ref, bo_ref,
     g2_ref, b2_ref, w1_ref, bm1_ref, w2_ref, bm2_ref) = refs[:13]
    if fuse_head:
        hw_ref, hb_ref, oh_ref = refs[13:]
    else:
        (o_ref,) = refs[13:]

    x = x_ref[...]                                  # (Bt, Lp, C) f32
    Bt, L, C = x.shape
    N = Bt * L
    x2 = x.reshape(N, C)                            # Lp % 8 == 0 -> tile-aligned

    # ---- attention residual -------------------------------------------------
    xn = _layernorm(x2, g1_ref[...], b1_ref[...])
    # fused QKV projection (1/sqrt(dh) already folded into the Q columns/bias)
    qkv = jnp.dot(xn.astype(jnp.bfloat16), wqkv_ref[...],
                  preferred_element_type=jnp.float32) + bqkv_ref[...]
    q = qkv[:, :C]
    k = qkv[:, C:2 * C]
    v = qkv[:, 2 * C:]

    def to_heads(t):
        # (N, C) -> (H*Bt, Lp, dh): heads join the batch dim of one einsum
        return jnp.concatenate(
            [t[:, h * dh:(h + 1) * dh].reshape(Bt, L, dh) for h in range(H)],
            axis=0).astype(jnp.bfloat16)

    qs, ks, vs = to_heads(q), to_heads(k), to_heads(v)

    s = jnp.einsum('bqd,bkd->bqk', qs, ks,
                   preferred_element_type=jnp.float32)        # (H*Bt, Lp, Lp)
    if L != L_real:                                           # mask padded keys
        key_idx = jax.lax.broadcasted_iota(jnp.int32, (1, 1, L), 2)
        s = jnp.where(key_idx < L_real, s, jnp.float32(-1e30))

    m = jnp.max(s, axis=-1, keepdims=True)
    p = jnp.exp(s - m)
    denom = jnp.sum(p, axis=-1, keepdims=True)
    p = (p * pl.reciprocal(denom, approx=True)).astype(jnp.bfloat16)

    o = jnp.einsum('bqk,bkd->bqd', p, vs,
                   preferred_element_type=jnp.float32)        # (H*Bt, Lp, dh)
    o_cat = jnp.concatenate(
        [o[h * Bt:(h + 1) * Bt].reshape(N, dh) for h in range(H)], axis=-1)

    attn = jnp.dot(o_cat.astype(jnp.bfloat16), wo_ref[...],
                   preferred_element_type=jnp.float32) + bo_ref[...]
    x2 = x2 + attn

    # ---- MLP residual -------------------------------------------------------
    xn2 = _layernorm(x2, g2_ref[...], b2_ref[...])
    h1 = _gelu(jnp.dot(xn2.astype(jnp.bfloat16), w1_ref[...],
                       preferred_element_type=jnp.float32) + bm1_ref[...])
    y = jnp.dot(h1.astype(jnp.bfloat16), w2_ref[...],
                preferred_element_type=jnp.float32) + bm2_ref[...]
    x2 = x2 + y

    if fuse_head:
        logits = jnp.dot(x2.astype(jnp.bfloat16), hw_ref[...],
                         preferred_element_type=jnp.float32) + hb_ref[...]
        oh_ref[...] = logits.reshape(Bt, L, -1)
    else:
        o_ref[...] = x2.reshape(Bt, L, C)


# ---------------------------------------------------------------------------
# pallas_call wrapper
# ---------------------------------------------------------------------------
def _full_spec(shape):
    return pl.BlockSpec(shape, lambda *_: (0,) * len(shape))


def fused_block(x_blc, blk, num_heads, L_real, Bt, head_w=None, head_b=None):
    B, Lp, C = x_blc.shape
    R = blk['w1'].shape[1]
    fuse_head = head_w is not None
    kernel = partial(block_kernel, num_heads, C // num_heads, L_real, fuse_head)

    in_specs = [
        pl.BlockSpec((Bt, Lp, C), lambda b: (b, 0, 0)),
        _full_spec((1, C)), _full_spec((1, C)),          # ln1 g, b
        _full_spec((C, 3 * C)), _full_spec((1, 3 * C)),  # wqkv, bqkv
        _full_spec((C, C)), _full_spec((1, C)),          # wo, bo
        _full_spec((1, C)), _full_spec((1, C)),          # ln2 g, b
        _full_spec((C, R)), _full_spec((1, R)),          # w1, b1
        _full_spec((R, C)), _full_spec((1, C)),          # w2, b2
    ]
    args = [x_blc, blk['ln1_g'], blk['ln1_b'], blk['wqkv'], blk['bqkv'],
            blk['wo'], blk['bo'], blk['ln2_g'], blk['ln2_b'],
            blk['w1'], blk['b1'], blk['w2'], blk['b2']]

    if fuse_head:
        DCp = head_w.shape[1]
        in_specs += [_full_spec((C, DCp)), _full_spec((1, DCp))]
        args += [head_w, head_b]
        out_shape = jax.ShapeDtypeStruct((B, Lp, DCp), jnp.float32)
        out_specs = pl.BlockSpec((Bt, Lp, DCp), lambda b: (b, 0, 0))
    else:
        out_shape = jax.ShapeDtypeStruct((B, Lp, C), jnp.float32)
        out_specs = pl.BlockSpec((Bt, Lp, C), lambda b: (b, 0, 0))

    return pl.pallas_call(
        kernel,
        out_shape=out_shape,
        grid=(B // Bt,),
        in_specs=in_specs,
        out_specs=out_specs,
        compiler_params=pltpu.CompilerParams(
            dimension_semantics=("parallel",),
            vmem_limit_bytes=32 * 1024 * 1024),
    )(*args)


# ---------------------------------------------------------------------------
# Parameters (deterministic synthetic init mirroring _init_weights):
#   Linear/Embedding weights ~ N(0, 0.02), biases = 0, LayerNorm g=1 b=0,
#   learned positional encoding initialized to zeros.
# Matmul weights are stored bf16 (MXU); LN params / biases stay f32.
# ---------------------------------------------------------------------------
def init_params(key, cfg):
    C = cfg['channels']
    R = cfg['residual_channels']
    V = cfg['v']
    S = cfg['t'] * cfg['h'] * cfg['w']
    DT = cfg['decoder_tokens']
    DC = cfg['decoder_channels']
    H = cfg['num_heads']
    dh = C // H
    scale = 1.0 / math.sqrt(dh)
    DCp = max(128, -(-DC // 128) * 128)     # lane-dense head output width

    keys = jax.random.split(key, 4 + 6 * cfg['num_blocks'])
    ki = iter(keys)
    nrm = lambda shape: (0.02 * jax.random.normal(next(ki), shape)).astype(jnp.float32)

    head_w = jnp.zeros((C, DCp), jnp.float32).at[:, :DC].set(nrm((C, DC)))
    params = dict(
        emb=nrm((V, C)),                        # GridEmbedding (grid cells = 1)
        dec_emb=nrm((DT, C)),                   # decoder_embedding.weight
        pos=jnp.zeros((S, 1, C), jnp.float32),  # learned pos enc (init zeros)
        head_w=head_w.astype(jnp.bfloat16),
        head_b=jnp.zeros((1, DCp), jnp.float32),
        blocks=[],
    )
    ones_c = jnp.ones((1, C), jnp.float32)
    zeros_c = jnp.zeros((1, C), jnp.float32)
    for _ in range(cfg['num_blocks']):
        wq, wk, wv, wo = nrm((C, C)), nrm((C, C)), nrm((C, C)), nrm((C, C))
        bq = bk = bv = jnp.zeros((1, C), jnp.float32)
        # fuse QKV and fold the 1/sqrt(dh) attention scale into the Q slice
        wqkv = jnp.concatenate([wq * scale, wk, wv], axis=1).astype(jnp.bfloat16)
        bqkv = jnp.concatenate([bq * scale, bk, bv], axis=1)
        blk = dict(
            ln1_g=ones_c, ln1_b=zeros_c,
            wqkv=wqkv, bqkv=bqkv,
            wo=wo.astype(jnp.bfloat16), bo=zeros_c,
            ln2_g=ones_c, ln2_b=zeros_c,
            w1=nrm((C, R)).astype(jnp.bfloat16), b1=jnp.zeros((1, R), jnp.float32),
            w2=nrm((R, C)).astype(jnp.bfloat16), b2=zeros_c,
        )
        params['blocks'].append(blk)
    return params


def _pick_batch_tile(B, Lp, C, H, R, budget=20 * 1024 * 1024, max_bt=8):
    """Largest divisor of B (<= max_bt) whose working set fits the VMEM budget."""
    best = 1
    for bt in range(1, min(B, max_bt) + 1):
        if B % bt:
            continue
        n = bt * Lp
        est = (4 * n * C * 4                    # residual stream copies (f32)
               + n * 3 * C * 6                  # qkv bf16 + f32 acc
               + 2 * H * bt * Lp * Lp * 4       # scores + probs (f32)
               + n * R * 6)                     # mlp hidden
        if est <= budget:
            best = bt
    return best


# ---------------------------------------------------------------------------
# Full forward pass (embedding gather / pad / transpose glue in plain JAX)
# ---------------------------------------------------------------------------
def transformer_forward(ids, params, cfg):
    S, B = ids.shape
    C = cfg['channels']
    R = cfg['residual_channels']
    DT = cfg['decoder_tokens']
    DC = cfg['decoder_channels']
    H = cfg['num_heads']

    # EmbeddingBlock (dropout = identity in eval)
    d = params['emb'][ids]                                    # (S, B, C)
    d = d + params['pos']                                     # (S, 1, C) broadcast
    s = jnp.broadcast_to(params['dec_emb'][:, None, :], (DT, B, C))
    x = jnp.concatenate([s, d], axis=0)                       # (L, B, C)
    L_real = DT + S

    # single layout change for the whole network: (L, B, C) -> (B, Lp, C)
    x = jnp.transpose(x, (1, 0, 2))
    L_pad = -(-L_real // 8) * 8
    if L_pad != L_real:
        x = jnp.pad(x, ((0, 0), (0, L_pad - L_real), (0, 0)))

    Bt = _pick_batch_tile(B, L_pad, C, H, R)
    blocks = params['blocks']
    assert len(blocks) >= 1

    for blk in blocks[:-1]:
        x = fused_block(x, blk, H, L_real, Bt)                # (B, Lp, C)

    # Final block with the ReadHead Linear fused in (decode_input=True ->
    # decode all tokens); lane-dense (128-padded) logits output.
    # TODO(synk): only the default decode_input=True / 'gpt' block / 'full'
    # mask / 'torch' attention path is implemented.
    logits = fused_block(x, blocks[-1], H, L_real, Bt,
                         head_w=params['head_w'], head_b=params['head_b'])

    y = logits[:, :L_real, :DC]                               # strip padding
    return jnp.transpose(y, (1, 0, 2))                        # (L, B, DC)


# ---------------------------------------------------------------------------
# Pure-JAX reference (same math, f32 everywhere) for correctness validation
# ---------------------------------------------------------------------------
def reference_forward(ids, params, cfg):
    S, B = ids.shape
    C = cfg['channels']
    H = cfg['num_heads']
    dh = C // H
    DT = cfg['decoder_tokens']
    DC = cfg['decoder_channels']

    d = params['emb'][ids] + params['pos']
    s = jnp.broadcast_to(params['dec_emb'][:, None, :], (DT, B, C))
    x = jnp.concatenate([s, d], axis=0)
    x = jnp.transpose(x, (1, 0, 2))                            # (B, L, C)
    L = DT + S
    for blk in params['blocks']:
        xn = _layernorm(x, blk['ln1_g'], blk['ln1_b'])
        qkv = xn @ blk['wqkv'].astype(jnp.float32) + blk['bqkv']
        q, k, v = qkv[..., :C], qkv[..., C:2 * C], qkv[..., 2 * C:]
        heads = lambda t: t.reshape(B, L, H, dh).transpose(0, 2, 1, 3)
        qh, kh, vh = heads(q), heads(k), heads(v)
        sc = jnp.einsum('bhqd,bhkd->bhqk', qh, kh)            # scale pre-folded
        p = jax.nn.softmax(sc, axis=-1)
        o = jnp.einsum('bhqk,bhkd->bhqd', p, vh)
        o = o.transpose(0, 2, 1, 3).reshape(B, L, C)
        x = x + o @ blk['wo'].astype(jnp.float32) + blk['bo']
        xn2 = _layernorm(x, blk['ln2_g'], blk['ln2_b'])
        h1 = _gelu(xn2 @ blk['w1'].astype(jnp.float32) + blk['b1'])
        x = x + h1 @ blk['w2'].astype(jnp.float32) + blk['b2']
    y = x @ params['head_w'].astype(jnp.float32) + params['head_b']
    return jnp.transpose(y[..., :DC], (1, 0, 2))


if __name__ == "__main__":
    # Small synthetic config (grid_t = grid_h = grid_w = 1, input_type='tokens')
    cfg = dict(v=64, t=1, h=4, w=4,
               channels=32, residual_channels=128,
               num_heads=4, num_blocks=2,
               decoder_tokens=2, decoder_channels=1)

    key = jax.random.PRNGKey(0)
    pkey, ikey = jax.random.split(key)
    params = init_params(pkey, cfg)

    S = cfg['t'] * cfg['h'] * cfg['w']
    B = 2
    ids = jax.random.randint(ikey, (S, B), 0, cfg['v'], dtype=jnp.int32)

    out = transformer_forward(ids, params, cfg)
    jax.block_until_ready(out)
    assert out.shape == (cfg['decoder_tokens'] + S, B, cfg['decoder_channels'])
    assert bool(jnp.all(jnp.isfinite(out)))

    # correctness check vs pure-JAX reference (loose tol: bf16 MXU inputs +
    # approx-reciprocal softmax in the kernel)
    ref = reference_forward(ids, params, cfg)
    err = float(jnp.max(jnp.abs(out - ref)))
    scale = float(jnp.max(jnp.abs(ref)))
    assert err <= 1e-3 + 5e-2 * scale, (err, scale)

    print("KERNEL_OK")
</pallas_src>

<mosaic_0001>
module attributes {stable_mosaic.version = 11 : i64} {
  func.func @block_kernel(%arg0: i32, %arg1: memref<2x24x32xf32, #tpu.memory_space<vmem>>, %arg2: memref<1x32xf32, #tpu.memory_space<vmem>>, %arg3: memref<1x32xf32, #tpu.memory_space<vmem>>, %arg4: memref<32x96xbf16, #tpu.memory_space<vmem>>, %arg5: memref<1x96xf32, #tpu.memory_space<vmem>>, %arg6: memref<32x32xbf16, #tpu.memory_space<vmem>>, %arg7: memref<1x32xf32, #tpu.memory_space<vmem>>, %arg8: memref<1x32xf32, #tpu.memory_space<vmem>>, %arg9: memref<1x32xf32, #tpu.memory_space<vmem>>, %arg10: memref<32x128xbf16, #tpu.memory_space<vmem>>, %arg11: memref<1x128xf32, #tpu.memory_space<vmem>>, %arg12: memref<128x32xbf16, #tpu.memory_space<vmem>>, %arg13: memref<1x32xf32, #tpu.memory_space<vmem>>, %arg14: memref<2x24x32xf32, #tpu.memory_space<vmem>>) attributes {dimension_semantics = [#tpu.dimension_semantics<parallel>], iteration_bounds = array<i64: 1>, scalar_prefetch = 0 : i64, scratch_operands = 0 : i64, tpu.core_type = #tpu.core_type<tc>, window_params = [{transform_indices = @transform_0, window_bounds = array<i64: 2, 24, 32>}, {pipeline_mode = #tpu.pipeline_mode<synchronous>, transform_indices = @transform_1, window_bounds = array<i64: 1, 32>}, {pipeline_mode = #tpu.pipeline_mode<synchronous>, transform_indices = @transform_2, window_bounds = array<i64: 1, 32>}, {pipeline_mode = #tpu.pipeline_mode<synchronous>, transform_indices = @transform_3, window_bounds = array<i64: 32, 96>}, {pipeline_mode = #tpu.pipeline_mode<synchronous>, transform_indices = @transform_4, window_bounds = array<i64: 1, 96>}, {pipeline_mode = #tpu.pipeline_mode<synchronous>, transform_indices = @transform_5, window_bounds = array<i64: 32, 32>}, {pipeline_mode = #tpu.pipeline_mode<synchronous>, transform_indices = @transform_6, window_bounds = array<i64: 1, 32>}, {pipeline_mode = #tpu.pipeline_mode<synchronous>, transform_indices = @transform_7, window_bounds = array<i64: 1, 32>}, {pipeline_mode = #tpu.pipeline_mode<synchronous>, transform_indices = @transform_8, window_bounds = array<i64: 1, 32>}, {pipeline_mode = #tpu.pipeline_mode<synchronous>, transform_indices = @transform_9, window_bounds = array<i64: 32, 128>}, {pipeline_mode = #tpu.pipeline_mode<synchronous>, transform_indices = @transform_10, window_bounds = array<i64: 1, 128>}, {pipeline_mode = #tpu.pipeline_mode<synchronous>, transform_indices = @transform_11, window_bounds = array<i64: 128, 32>}, {pipeline_mode = #tpu.pipeline_mode<synchronous>, transform_indices = @transform_12, window_bounds = array<i64: 1, 32>}, {transform_indices = @transform_13, window_bounds = array<i64: 2, 24, 32>}]} {
    %c0 = arith.constant 0 : index
    %c0_0 = arith.constant 0 : index
    %c0_1 = arith.constant 0 : index
    %0 = vector.load %arg1[%c0, %c0_0, %c0_1] : memref<2x24x32xf32, #tpu.memory_space<vmem>>, vector<2x24x32xf32>
    %1 = vector.shape_cast %0 : vector<2x24x32xf32> to vector<48x32xf32>
    %c0_2 = arith.constant 0 : index
    %c0_3 = arith.constant 0 : index
    %2 = vector.load %arg2[%c0_2, %c0_3] : memref<1x32xf32, #tpu.memory_space<vmem>>, vector<1x32xf32>
    %c0_4 = arith.constant 0 : index
    %c0_5 = arith.constant 0 : index
    %3 = vector.load %arg3[%c0_4, %c0_5] : memref<1x32xf32, #tpu.memory_space<vmem>>, vector<1x32xf32>
    %cst = arith.constant dense<0.000000e+00> : vector<48xf32>
    %4 = vector.multi_reduction <add>, %1, %cst [1] : vector<48x32xf32> to vector<48xf32>
    %5 = vector.shape_cast %4 : vector<48xf32> to vector<48x1xf32>
    %cst_6 = arith.constant 3.200000e+01 : f32
    %6 = vector.broadcast %cst_6 : f32 to vector<48x1xf32>
    %7 = arith.divf %5, %6 : vector<48x1xf32>
    %8 = vector.broadcast %7 : vector<48x1xf32> to vector<48x32xf32>
    %9 = arith.subf %1, %8 : vector<48x32xf32>
    %10 = arith.mulf %9, %9 : vector<48x32xf32>
    %cst_7 = arith.constant dense<0.000000e+00> : vector<48xf32>
    %11 = vector.multi_reduction <add>, %10, %cst_7 [1] : vector<48x32xf32> to vector<48xf32>
    %12 = vector.shape_cast %11 : vector<48xf32> to vector<48x1xf32>
    %cst_8 = arith.constant 3.200000e+01 : f32
    %13 = vector.broadcast %cst_8 : f32 to vector<48x1xf32>
    %14 = arith.divf %12, %13 : vector<48x1xf32>
    %15 = vector.broadcast %7 : vector<48x1xf32> to vector<48x32xf32>
    %16 = arith.subf %1, %15 : vector<48x32xf32>
    %cst_9 = arith.constant 9.99999974E-6 : f32
    %17 = vector.broadcast %cst_9 : f32 to vector<48x1xf32>
    %18 = arith.addf %14, %17 : vector<48x1xf32>
    %19 = math.rsqrt %18 : vector<48x1xf32>
    %20 = vector.broadcast %19 : vector<48x1xf32> to vector<48x32xf32>
    %21 = arith.mulf %16, %20 : vector<48x32xf32>
    %22 = vector.broadcast %2 : vector<1x32xf32> to vector<48x32xf32>
    %23 = arith.mulf %21, %22 : vector<48x32xf32>
    %24 = vector.broadcast %3 : vector<1x32xf32> to vector<48x32xf32>
    %25 = arith.addf %23, %24 : vector<48x32xf32>
    %26 = arith.truncf %25 : vector<48x32xf32> to vector<48x32xbf16>
    %c0_10 = arith.constant 0 : index
    %c0_11 = arith.constant 0 : index
    %27 = vector.load %arg4[%c0_10, %c0_11] : memref<32x96xbf16, #tpu.memory_space<vmem>>, vector<32x96xbf16>
    %cst_12 = arith.constant dense<0.000000e+00> : vector<48x96xf32>
    %28 = tpu.matmul %26, %27, %cst_12 {dimension_numbers = #tpu.dot_dimension_numbers<[1], [0], [0], [1], [0, 0, 1, 1], [], []>} : vector<48x32xbf16>, vector<32x96xbf16>, vector<48x96xf32> -> vector<48x96xf32>
    %c0_13 = arith.constant 0 : index
    %c0_14 = arith.constant 0 : index
    %29 = vector.load %arg5[%c0_13, %c0_14] : memref<1x96xf32, #tpu.memory_space<vmem>>, vector<1x96xf32>
    %30 = vector.broadcast %29 : vector<1x96xf32> to vector<48x96xf32>
    %31 = arith.addf %28, %30 : vector<48x96xf32>
    %32 = vector.extract_strided_slice %31 {offsets = [0, 0], sizes = [48, 32], strides = [1, 1]} : vector<48x96xf32> to vector<48x32xf32>
    %33 = vector.extract_strided_slice %31 {offsets = [0, 32], sizes = [48, 32], strides = [1, 1]} : vector<48x96xf32> to vector<48x32xf32>
    %34 = vector.extract_strided_slice %31 {offsets = [0, 64], sizes = [48, 32], strides = [1, 1]} : vector<48x96xf32> to vector<48x32xf32>
    %35 = vector.extract_strided_slice %32 {offsets = [0, 0], sizes = [48, 8], strides = [1, 1]} : vector<48x32xf32> to vector<48x8xf32>
    %36 = vector.shape_cast %35 : vector<48x8xf32> to vector<2x24x8xf32>
    %37 = vector.extract_strided_slice %32 {offsets = [0, 8], sizes = [48, 8], strides = [1, 1]} : vector<48x32xf32> to vector<48x8xf32>
    %38 = vector.shape_cast %37 : vector<48x8xf32> to vector<2x24x8xf32>
    %39 = vector.extract_strided_slice %32 {offsets = [0, 16], sizes = [48, 8], strides = [1, 1]} : vector<48x32xf32> to vector<48x8xf32>
    %40 = vector.shape_cast %39 : vector<48x8xf32> to vector<2x24x8xf32>
    %41 = vector.extract_strided_slice %32 {offsets = [0, 24], sizes = [48, 8], strides = [1, 1]} : vector<48x32xf32> to vector<48x8xf32>
    %42 = vector.shape_cast %41 : vector<48x8xf32> to vector<2x24x8xf32>
    %43 = tpu.concatenate %36, %38, %40, %42 in 0 : vector<2x24x8xf32>, vector<2x24x8xf32>, vector<2x24x8xf32>, vector<2x24x8xf32> -> vector<8x24x8xf32>
    %44 = arith.truncf %43 : vector<8x24x8xf32> to vector<8x24x8xbf16>
    %45 = vector.extract_strided_slice %33 {offsets = [0, 0], sizes = [48, 8], strides = [1, 1]} : vector<48x32xf32> to vector<48x8xf32>
    %46 = vector.shape_cast %45 : vector<48x8xf32> to vector<2x24x8xf32>
    %47 = vector.extract_strided_slice %33 {offsets = [0, 8], sizes = [48, 8], strides = [1, 1]} : vector<48x32xf32> to vector<48x8xf32>
    %48 = vector.shape_cast %47 : vector<48x8xf32> to vector<2x24x8xf32>
    %49 = vector.extract_strided_slice %33 {offsets = [0, 16], sizes = [48, 8], strides = [1, 1]} : vector<48x32xf32> to vector<48x8xf32>
    %50 = vector.shape_cast %49 : vector<48x8xf32> to vector<2x24x8xf32>
    %51 = vector.extract_strided_slice %33 {offsets = [0, 24], sizes = [48, 8], strides = [1, 1]} : vector<48x32xf32> to vector<48x8xf32>
    %52 = vector.shape_cast %51 : vector<48x8xf32> to vector<2x24x8xf32>
    %53 = tpu.concatenate %46, %48, %50, %52 in 0 : vector<2x24x8xf32>, vector<2x24x8xf32>, vector<2x24x8xf32>, vector<2x24x8xf32> -> vector<8x24x8xf32>
    %54 = arith.truncf %53 : vector<8x24x8xf32> to vector<8x24x8xbf16>
    %55 = vector.extract_strided_slice %34 {offsets = [0, 0], sizes = [48, 8], strides = [1, 1]} : vector<48x32xf32> to vector<48x8xf32>
    %56 = vector.shape_cast %55 : vector<48x8xf32> to vector<2x24x8xf32>
    %57 = vector.extract_strided_slice %34 {offsets = [0, 8], sizes = [48, 8], strides = [1, 1]} : vector<48x32xf32> to vector<48x8xf32>
    %58 = vector.shape_cast %57 : vector<48x8xf32> to vector<2x24x8xf32>
    %59 = vector.extract_strided_slice %34 {offsets = [0, 16], sizes = [48, 8], strides = [1, 1]} : vector<48x32xf32> to vector<48x8xf32>
    %60 = vector.shape_cast %59 : vector<48x8xf32> to vector<2x24x8xf32>
    %61 = vector.extract_strided_slice %34 {offsets = [0, 24], sizes = [48, 8], strides = [1, 1]} : vector<48x32xf32> to vector<48x8xf32>
    %62 = vector.shape_cast %61 : vector<48x8xf32> to vector<2x24x8xf32>
    %63 = tpu.concatenate %56, %58, %60, %62 in 0 : vector<2x24x8xf32>, vector<2x24x8xf32>, vector<2x24x8xf32>, vector<2x24x8xf32> -> vector<8x24x8xf32>
    %64 = arith.truncf %63 : vector<8x24x8xf32> to vector<8x24x8xbf16>
    "tpu.trace_start"() <{level = 10 : i32, message = "bqd,bkd->bqk"}> : () -> ()
    %cst_15 = arith.constant dense<0.000000e+00> : vector<8x24x24xf32>
    %65 = tpu.matmul %44, %54, %cst_15 {dimension_numbers = #tpu.dot_dimension_numbers<[2], [2], [1], [1], [0, 0, 0, 1, 1, 1], [0], [0]>} : vector<8x24x8xbf16>, vector<8x24x8xbf16>, vector<8x24x24xf32> -> vector<8x24x24xf32>
    "tpu.trace_stop"() : () -> ()
    %66 = tpu.iota {dimensions = array<i32: 2>} : vector<1x1x24xi32>
    %c18_i32 = arith.constant 18 : i32
    %67 = vector.broadcast %c18_i32 : i32 to vector<1x1x24xi32>
    %68 = arith.cmpi slt, %66, %67 : vector<1x1x24xi32>
    %cst_16 = arith.constant -1.000000e+30 : f32
    %69 = vector.shape_cast %68 : vector<1x1x24xi1> to vector<1x1x24xi1>
    %70 = vector.broadcast %69 : vector<1x1x24xi1> to vector<8x24x24xi1>
    %71 = vector.broadcast %cst_16 : f32 to vector<8x24x24xf32>
    %72 = arith.select %70, %65, %71 : vector<8x24x24xi1>, vector<8x24x24xf32>
    %cst_17 = arith.constant dense<0xFF800000> : vector<8x24xf32>
    %73 = vector.multi_reduction <maximumf>, %72, %cst_17 [2] : vector<8x24x24xf32> to vector<8x24xf32>
    %74 = vector.shape_cast %73 : vector<8x24xf32> to vector<8x24x1xf32>
    %75 = vector.broadcast %74 : vector<8x24x1xf32> to vector<8x24x24xf32>
    %76 = arith.subf %72, %75 : vector<8x24x24xf32>
    %77 = math.exp %76 : vector<8x24x24xf32>
    %cst_18 = arith.constant dense<0.000000e+00> : vector<8x24xf32>
    %78 = vector.multi_reduction <add>, %77, %cst_18 [2] : vector<8x24x24xf32> to vector<8x24xf32>
    %79 = vector.shape_cast %78 : vector<8x24xf32> to vector<8x24x1xf32>
    %80 = tpu.reciprocal %79 {approx = true} : vector<8x24x1xf32> -> vector<8x24x1xf32>
    %81 = vector.broadcast %80 : vector<8x24x1xf32> to vector<8x24x24xf32>
    %82 = arith.mulf %77, %81 : vector<8x24x24xf32>
    %83 = arith.truncf %82 : vector<8x24x24xf32> to vector<8x24x24xbf16>
    "tpu.trace_start"() <{level = 10 : i32, message = "bqk,bkd->bqd"}> : () -> ()
    %cst_19 = arith.constant dense<0.000000e+00> : vector<8x24x8xf32>
    %84 = tpu.matmul %83, %64, %cst_19 {dimension_numbers = #tpu.dot_dimension_numbers<[2], [1], [1], [2], [0, 0, 0, 1, 1, 2], [0], [0]>} : vector<8x24x24xbf16>, vector<8x24x8xbf16>, vector<8x24x8xf32> -> vector<8x24x8xf32>
    "tpu.trace_stop"() : () -> ()
    %85 = vector.extract_strided_slice %84 {offsets = [0, 0, 0], sizes = [2, 24, 8], strides = [1, 1, 1]} : vector<8x24x8xf32> to vector<2x24x8xf32>
    %86 = vector.shape_cast %85 : vector<2x24x8xf32> to vector<48x8xf32>
    %87 = vector.extract_strided_slice %84 {offsets = [2, 0, 0], sizes = [2, 24, 8], strides = [1, 1, 1]} : vector<8x24x8xf32> to vector<2x24x8xf32>
    %88 = vector.shape_cast %87 : vector<2x24x8xf32> to vector<48x8xf32>
    %89 = vector.extract_strided_slice %84 {offsets = [4, 0, 0], sizes = [2, 24, 8], strides = [1, 1, 1]} : vector<8x24x8xf32> to vector<2x24x8xf32>
    %90 = vector.shape_cast %89 : vector<2x24x8xf32> to vector<48x8xf32>
    %91 = vector.extract_strided_slice %84 {offsets = [6, 0, 0], sizes = [2, 24, 8], strides = [1, 1, 1]} : vector<8x24x8xf32> to vector<2x24x8xf32>
    %92 = vector.shape_cast %91 : vector<2x24x8xf32> to vector<48x8xf32>
    %93 = tpu.concatenate %86, %88, %90, %92 in 1 : vector<48x8xf32>, vector<48x8xf32>, vector<48x8xf32>, vector<48x8xf32> -> vector<48x32xf32>
    %94 = arith.truncf %93 : vector<48x32xf32> to vector<48x32xbf16>
    %c0_20 = arith.constant 0 : index
    %c0_21 = arith.constant 0 : index
    %95 = vector.load %arg6[%c0_20, %c0_21] : memref<32x32xbf16, #tpu.memory_space<vmem>>, vector<32x32xbf16>
    %cst_22 = arith.constant dense<0.000000e+00> : vector<48x32xf32>
    %96 = tpu.matmul %94, %95, %cst_22 {dimension_numbers = #tpu.dot_dimension_numbers<[1], [0], [0], [1], [0, 0, 1, 1], [], []>} : vector<48x32xbf16>, vector<32x32xbf16>, vector<48x32xf32> -> vector<48x32xf32>
    %c0_23 = arith.constant 0 : index
    %c0_24 = arith.constant 0 : index
    %97 = vector.load %arg7[%c0_23, %c0_24] : memref<1x32xf32, #tpu.memory_space<vmem>>, vector<1x32xf32>
    %98 = vector.broadcast %97 : vector<1x32xf32> to vector<48x32xf32>
    %99 = arith.addf %96, %98 : vector<48x32xf32>
    %100 = arith.addf %1, %99 : vector<48x32xf32>
    %c0_25 = arith.constant 0 : index
    %c0_26 = arith.constant 0 : index
    %101 = vector.load %arg8[%c0_25, %c0_26] : memref<1x32xf32, #tpu.memory_space<vmem>>, vector<1x32xf32>
    %c0_27 = arith.constant 0 : index
    %c0_28 = arith.constant 0 : index
    %102 = vector.load %arg9[%c0_27, %c0_28] : memref<1x32xf32, #tpu.memory_space<vmem>>, vector<1x32xf32>
    %cst_29 = arith.constant dense<0.000000e+00> : vector<48xf32>
    %103 = vector.multi_reduction <add>, %100, %cst_29 [1] : vector<48x32xf32> to vector<48xf32>
    %104 = vector.shape_cast %103 : vector<48xf32> to vector<48x1xf32>
    %cst_30 = arith.constant 3.200000e+01 : f32
    %105 = vector.broadcast %cst_30 : f32 to vector<48x1xf32>
    %106 = arith.divf %104, %105 : vector<48x1xf32>
    %107 = vector.broadcast %106 : vector<48x1xf32> to vector<48x32xf32>
    %108 = arith.subf %100, %107 : vector<48x32xf32>
    %109 = arith.mulf %108, %108 : vector<48x32xf32>
    %cst_31 = arith.constant dense<0.000000e+00> : vector<48xf32>
    %110 = vector.multi_reduction <add>, %109, %cst_31 [1] : vector<48x32xf32> to vector<48xf32>
    %111 = vector.shape_cast %110 : vector<48xf32> to vector<48x1xf32>
    %cst_32 = arith.constant 3.200000e+01 : f32
    %112 = vector.broadcast %cst_32 : f32 to vector<48x1xf32>
    %113 = arith.divf %111, %112 : vector<48x1xf32>
    %114 = vector.broadcast %106 : vector<48x1xf32> to vector<48x32xf32>
    %115 = arith.subf %100, %114 : vector<48x32xf32>
    %cst_33 = arith.constant 9.99999974E-6 : f32
    %116 = vector.broadcast %cst_33 : f32 to vector<48x1xf32>
    %117 = arith.addf %113, %116 : vector<48x1xf32>
    %118 = math.rsqrt %117 : vector<48x1xf32>
    %119 = vector.broadcast %118 : vector<48x1xf32> to vector<48x32xf32>
    %120 = arith.mulf %115, %119 : vector<48x32xf32>
    %121 = vector.broadcast %101 : vector<1x32xf32> to vector<48x32xf32>
    %122 = arith.mulf %120, %121 : vector<48x32xf32>
    %123 = vector.broadcast %102 : vector<1x32xf32> to vector<48x32xf32>
    %124 = arith.addf %122, %123 : vector<48x32xf32>
    %125 = arith.truncf %124 : vector<48x32xf32> to vector<48x32xbf16>
    %c0_34 = arith.constant 0 : index
    %c0_35 = arith.constant 0 : index
    %126 = vector.load %arg10[%c0_34, %c0_35] : memref<32x128xbf16, #tpu.memory_space<vmem>>, vector<32x128xbf16>
    %cst_36 = arith.constant dense<0.000000e+00> : vector<48x128xf32>
    %127 = tpu.matmul %125, %126, %cst_36 {dimension_numbers = #tpu.dot_dimension_numbers<[1], [0], [0], [1], [0, 0, 1, 1], [], []>} : vector<48x32xbf16>, vector<32x128xbf16>, vector<48x128xf32> -> vector<48x128xf32>
    %c0_37 = arith.constant 0 : index
    %c0_38 = arith.constant 0 : index
    %128 = vector.load %arg11[%c0_37, %c0_38] : memref<1x128xf32, #tpu.memory_space<vmem>>, vector<1x128xf32>
    %129 = vector.broadcast %128 : vector<1x128xf32> to vector<48x128xf32>
    %130 = arith.addf %127, %129 : vector<48x128xf32>
    %cst_39 = arith.constant 5.000000e-01 : f32
    %131 = vector.broadcast %cst_39 : f32 to vector<48x128xf32>
    %132 = arith.mulf %131, %130 : vector<48x128xf32>
    %cst_40 = arith.constant 0.707106769 : f32
    %133 = vector.broadcast %cst_40 : f32 to vector<48x128xf32>
    %134 = arith.mulf %130, %133 : vector<48x128xf32>
    %135 = math.erf %134 : vector<48x128xf32>
    %cst_41 = arith.constant 1.000000e+00 : f32
    %136 = vector.broadcast %cst_41 : f32 to vector<48x128xf32>
    %137 = arith.addf %136, %135 : vector<48x128xf32>
    %138 = arith.mulf %132, %137 : vector<48x128xf32>
    %139 = arith.truncf %138 : vector<48x128xf32> to vector<48x128xbf16>
    %c0_42 = arith.constant 0 : index
    %c0_43 = arith.constant 0 : index
    %140 = vector.load %arg12[%c0_42, %c0_43] : memref<128x32xbf16, #tpu.memory_space<vmem>>, vector<128x32xbf16>
    %cst_44 = arith.constant dense<0.000000e+00> : vector<48x32xf32>
    %141 = tpu.matmul %139, %140, %cst_44 {dimension_numbers = #tpu.dot_dimension_numbers<[1], [0], [0], [1], [0, 0, 1, 1], [], []>} : vector<48x128xbf16>, vector<128x32xbf16>, vector<48x32xf32> -> vector<48x32xf32>
    %c0_45 = arith.constant 0 : index
    %c0_46 = arith.constant 0 : index
    %142 = vector.load %arg13[%c0_45, %c0_46] : memref<1x32xf32, #tpu.memory_space<vmem>>, vector<1x32xf32>
    %143 = vector.broadcast %142 : vector<1x32xf32> to vector<48x32xf32>
    %144 = arith.addf %141, %143 : vector<48x32xf32>
    %145 = arith.addf %100, %144 : vector<48x32xf32>
    %146 = vector.shape_cast %145 : vector<48x32xf32> to vector<2x24x32xf32>
    %c0_47 = arith.constant 0 : index
    %c0_48 = arith.constant 0 : index
    %c0_49 = arith.constant 0 : index
    %147 = vector.load %arg14[%c0_47, %c0_48, %c0_49] : memref<2x24x32xf32, #tpu.memory_space<vmem>>, vector<2x24x32xf32>
    tpu.vector_store %arg14[%c0_47, %c0_48, %c0_49], %146 {strides = array<i32>} : memref<2x24x32xf32, #tpu.memory_space<vmem>>, vector<2x24x32xf32>,
    return
  }
  func.func @transform_0(%arg0: i32) -> (i32, i32, i32) {
    %c0_i32 = arith.constant 0 : i32
    %c0_i32_0 = arith.constant 0 : i32
    %c0_i32_1 = arith.constant 0 : i32
    return %arg0, %c0_i32, %c0_i32_0 : i32, i32, i32
  }
  func.func @transform_1(%arg0: i32) -> (i32, i32) {
    %c0_i32 = arith.constant 0 : i32
    %c0_i32_0 = arith.constant 0 : i32
    %c0_i32_1 = arith.constant 0 : i32
    return %c0_i32, %c0_i32_0 : i32, i32
  }
  func.func @transform_2(%arg0: i32) -> (i32, i32) {
    %c0_i32 = arith.constant 0 : i32
    %c0_i32_0 = arith.constant 0 : i32
    %c0_i32_1 = arith.constant 0 : i32
    return %c0_i32, %c0_i32_0 : i32, i32
  }
  func.func @transform_3(%arg0: i32) -> (i32, i32) {
    %c0_i32 = arith.constant 0 : i32
    %c0_i32_0 = arith.constant 0 : i32
    %c0_i32_1 = arith.constant 0 : i32
    return %c0_i32, %c0_i32_0 : i32, i32
  }
  func.func @transform_4(%arg0: i32) -> (i32, i32) {
    %c0_i32 = arith.constant 0 : i32
    %c0_i32_0 = arith.constant 0 : i32
    %c0_i32_1 = arith.constant 0 : i32
    return %c0_i32, %c0_i32_0 : i32, i32
  }
  func.func @transform_5(%arg0: i32) -> (i32, i32) {
    %c0_i32 = arith.constant 0 : i32
    %c0_i32_0 = arith.constant 0 : i32
    %c0_i32_1 = arith.constant 0 : i32
    return %c0_i32, %c0_i32_0 : i32, i32
  }
  func.func @transform_6(%arg0: i32) -> (i32, i32) {
    %c0_i32 = arith.constant 0 : i32
    %c0_i32_0 = arith.constant 0 : i32
    %c0_i32_1 = arith.constant 0 : i32
    return %c0_i32, %c0_i32_0 : i32, i32
  }
  func.func @transform_7(%arg0: i32) -> (i32, i32) {
    %c0_i32 = arith.constant 0 : i32
    %c0_i32_0 = arith.constant 0 : i32
    %c0_i32_1 = arith.constant 0 : i32
    return %c0_i32, %c0_i32_0 : i32, i32
  }
  func.func @transform_8(%arg0: i32) -> (i32, i32) {
    %c0_i32 = arith.constant 0 : i32
    %c0_i32_0 = arith.constant 0 : i32
    %c0_i32_1 = arith.constant 0 : i32
    return %c0_i32, %c0_i32_0 : i32, i32
  }
  func.func @transform_9(%arg0: i32) -> (i32, i32) {
    %c0_i32 = arith.constant 0 : i32
    %c0_i32_0 = arith.constant 0 : i32
    %c0_i32_1 = arith.constant 0 : i32
    return %c0_i32, %c0_i32_0 : i32, i32
  }
  func.func @transform_10(%arg0: i32) -> (i32, i32) {
    %c0_i32 = arith.constant 0 : i32
    %c0_i32_0 = arith.constant 0 : i32
    %c0_i32_1 = arith.constant 0 : i32
    return %c0_i32, %c0_i32_0 : i32, i32
  }
  func.func @transform_11(%arg0: i32) -> (i32, i32) {
    %c0_i32 = arith.constant 0 : i32
    %c0_i32_0 = arith.constant 0 : i32
    %c0_i32_1 = arith.constant 0 : i32
    return %c0_i32, %c0_i32_0 : i32, i32
  }
  func.func @transform_12(%arg0: i32) -> (i32, i32) {
    %c0_i32 = arith.constant 0 : i32
    %c0_i32_0 = arith.constant 0 : i32
    %c0_i32_1 = arith.constant 0 : i32
    return %c0_i32, %c0_i32_0 : i32, i32
  }
  func.func @transform_13(%arg0: i32) -> (i32, i32, i32) {
    %c0_i32 = arith.constant 0 : i32
    %c0_i32_0 = arith.constant 0 : i32
    %c0_i32_1 = arith.constant 0 : i32
    return %arg0, %c0_i32, %c0_i32_0 : i32, i32, i32
  }
}

</mosaic_0001>

<bundles_post_ra>
// kernel: tpu_custom_call.1
= control target key start
LH: loop header
LB: loop body
LE: loop exit
PB: predicated region body
PF: predicated region fallthrough
CT: control target
= control target key end

     0   :  { %18 = vsyncpa [#allocation3], 0  ;;  %s3972_s0 = inlined_call_operand.vmem [shape: f32[2,24,32], index: 0, kind: input, shape index: {}]   ;;  %s3973_s1 = inlined_call_operand.vmem [shape: f32[1,32], index: 1, kind: input, shape index: {}]   ;;  %s3974_s2 = inlined_call_operand.vmem [shape: f32[1,32], index: 2, kind: input, shape index: {}]   ;;  %s3975_s3 = inlined_call_operand.vmem [shape: bf16[32,96], index: 3, kind: input, shape index: {}]   ;;  %s3976_s4 = inlined_call_operand.hbm [shape: f32[1,96], index: 4, kind: input, shape index: {}]   ;;  %s3977_s5 = inlined_call_operand.vmem [shape: bf16[32,32], index: 5, kind: input, shape index: {}]   ;;  %s3978_s6 = inlined_call_operand.hbm [shape: f32[1,32], index: 6, kind: input, shape index: {}]   ;;  %s3979_s7 = inlined_call_operand.hbm [shape: f32[1,32], index: 7, kind: input, shape index: {}]   ;;  %s3980_s8 = inlined_call_operand.hbm [shape: f32[1,32], index: 8, kind: input, shape index: {}]   ;;  %s3981_s9 = inlined_call_operand.vmem [shape: bf16[32,128], index: 9, kind: input, shape index: {}]   ;;  %s3982_s10 = inlined_call_operand.vmem [shape: f32[1,128], index: 10, kind: input, shape index: {}]   ;;  %s3983_s11 = inlined_call_operand.vmem [shape: bf16[128,32], index: 11, kind: input, shape index: {}]   ;;  %s3984_s12 = inlined_call_operand.vmem [shape: f32[1,32], index: 12, kind: input, shape index: {}]   ;;  %s3985_s13 = inlined_call_operand.hbm [shape: f32[2,24,32], index: 13, kind: output, shape index: {}]  }
   0x1   :  { %19 = vsyncpa [#allocation6], 0 }
   0x2   :  { %20 = vsyncpa [#allocation9], 0 }
   0x3   :  { %21 = vsyncpa [#allocation4], 0  ;;  %s3028_s25 = smov [#allocation5]   ;;  %s3029_s27 = smov [#allocation2]  }
   0x4   :  { %s48_s26 = sshll.u32 %s3028_s25, 4  ;;  %s36_s28 = sshll.u32 %s3029_s27, 4  ;;  %s49_s26 = int_to_ptr.vmem [resolvable:$true] %s48_s26  ;;  %s37_s28 = int_to_ptr.vmem [resolvable:$true] %s36_s28 }
   0x5   :  { %s2910_s14 = scalar_lea.hbm %s3978_s6, 16 }
   0x6   :  { %p2911_p0 = scmp.ne.s32.totalorder %s3978_s6, %s2910_s14  ;;  %p2914_p1 = scmp.lt.u32.totalorder %s2910_s14, %s3978_s6 }
   0x8   :  { %p2916_p2 = pnand %p2914_p1, %p2911_p0 }
   0xa   :  { %2919 = shalt.err (!%p2916_p2)
}
   0xb   :  { %s2920_s19 = scalar_lea.vmem %s49_s26, 16  ;;  %s2924_s20 = scalar_lea.vmem %s49_s26, 32 }
   0xc   :  { %p2921_p3 = scmp.ne.s32.totalorder %s49_s26, %s2920_s19  ;;  %p2925_p4 = scmp.lt.s32.totalorder %s49_s26, %s49_s26 }
   0xd   :  { %p2926_p5 = scmp.lt.s32.totalorder %s2924_s20, %s2920_s19 }
   0xf   :  { %p2927_p6 = por %p2926_p5, %p2925_p4 }
  0x11   :  { %p2928_p7 = pnand %p2927_p6, %p2921_p3 }
  0x13   :  { %2931 = shalt.err (!%p2928_p7)
}
  0x14   :  { %51 = dma.hbm_to_vmem [thread:$0]  %s3978_s6, 16, %s49_s26, [#allocation6]  }
  0x15   :  { %s2932_s25 = scalar_lea.hbm %s3976_s4, 16 }
  0x16   :  { %p2933_p8 = scmp.ne.s32.totalorder %s3976_s4, %s2932_s25  ;;  %p2936_p9 = scmp.lt.u32.totalorder %s2932_s25, %s3976_s4 }
  0x18   :  { %p2938_p10 = pnand %p2936_p9, %p2933_p8 }
  0x1a   :  { %2941 = shalt.err (!%p2938_p10)
}
  0x1b   :  { %s2942_s15 = scalar_lea.vmem %s37_s28, 16  ;;  %s2946_s16 = scalar_lea.vmem %s37_s28, 32 }
  0x1c   :  { %p2943_p11 = scmp.ne.s32.totalorder %s37_s28, %s2942_s15  ;;  %p2947_p12 = scmp.lt.s32.totalorder %s37_s28, %s37_s28 }
  0x1d   :  { %p2948_p13 = scmp.lt.s32.totalorder %s2946_s16, %s2942_s15 }
  0x1f   :  { %p2949_p0 = por %p2948_p13, %p2947_p12 }
  0x21   :  { %p2950_p1 = pnand %p2949_p0, %p2943_p11 }
  0x23   :  { %2953 = shalt.err (!%p2950_p1)
}
  0x24   :  { %39 = dma.hbm_to_vmem [thread:$0]  %s3976_s4, 16, %s37_s28, [#allocation3]  }
  0x25   :  { %s3030_s17 = smov [#allocation7]   ;;  %s3031_s19 = smov [#allocation8]  }
  0x26   :  { %s58_s18 = sshll.u32 %s3030_s17, 4  ;;  %s68_s20 = sshll.u32 %s3031_s19, 4  ;;  %s59_s18 = int_to_ptr.vmem [resolvable:$true] %s58_s18  ;;  %s69_s20 = int_to_ptr.vmem [resolvable:$true] %s68_s20 }
  0x27   :  { %s2954_s23 = scalar_lea.hbm %s3979_s7, 16 }
  0x28   :  { %p2955_p2 = scmp.ne.s32.totalorder %s3979_s7, %s2954_s23  ;;  %p2958_p3 = scmp.lt.u32.totalorder %s2954_s23, %s3979_s7 }
  0x2a   :  { %p2960_p4 = pnand %p2958_p3, %p2955_p2 }
  0x2c   :  { %2963 = shalt.err (!%p2960_p4)
}
  0x2d   :  { %s2964_s4 = scalar_lea.vmem %s59_s18, 16  ;;  %s2968_s28 = scalar_lea.vmem %s59_s18, 32 }
  0x2e   :  { %p2965_p5 = scmp.ne.s32.totalorder %s59_s18, %s2964_s4  ;;  %p2969_p6 = scmp.lt.s32.totalorder %s59_s18, %s59_s18 }
  0x2f   :  { %p2970_p7 = scmp.lt.s32.totalorder %s2968_s28, %s2964_s4 }
  0x31   :  { %p2971_p8 = por %p2970_p7, %p2969_p6 }
  0x33   :  { %p2972_p9 = pnand %p2971_p8, %p2965_p5 }
  0x35   :  { %2975 = shalt.err (!%p2972_p9)
}
  0x36   :  { %61 = dma.hbm_to_vmem [thread:$0]  %s3979_s7, 16, %s59_s18, [#allocation6]  }
  0x37   :  { %s2976_s6 = scalar_lea.hbm %s3980_s8, 16 }
  0x38   :  { %p2977_p10 = scmp.ne.s32.totalorder %s3980_s8, %s2976_s6  ;;  %p2980_p11 = scmp.lt.u32.totalorder %s2976_s6, %s3980_s8 }
  0x3a   :  { %p2982_p12 = pnand %p2980_p11, %p2977_p10 }
  0x3c   :  { %2985 = shalt.err (!%p2982_p12)
}
  0x3d   :  { %s2986_s22 = scalar_lea.vmem %s69_s20, 16  ;;  %s2990_s23 = scalar_lea.vmem %s69_s20, 32 }
  0x3e   :  { %p2987_p13 = scmp.ne.s32.totalorder %s69_s20, %s2986_s22  ;;  %p2991_p0 = scmp.lt.s32.totalorder %s69_s20, %s69_s20 }
  0x3f   :  { %p2992_p1 = scmp.lt.s32.totalorder %s2990_s23, %s2986_s22 }
  0x41   :  { %p2993_p2 = por %p2992_p1, %p2991_p0 }
  0x43   :  { %p2994_p3 = pnand %p2993_p2, %p2987_p13 }
  0x45   :  { %2997 = shalt.err (!%p2994_p3)
}
  0x46   :  { %71 = dma.hbm_to_vmem [thread:$0]  %s3980_s8, 16, %s69_s20, [#allocation9]  }
  0x47   :  { %3020 = dma.done.wait [#allocation3], 16  }
  0x48   :  { %3021 = vsyncadd [#allocation3], 4294967280 }
  0x49   :  { %3022 = dma.done.wait [#allocation6], 32  }
  0x4a   :  { %3023 = vsyncadd [#allocation6], 4294967264 }
  0x4b   :  { %3024 = dma.done.wait [#allocation9], 16  }
  0x4c   :  { %3025 = vsyncadd [#allocation9], 4294967280  ;;  %vm101_vm0 = vcmask 261120   ;;  %v93_v0 = vld [vmem:[%s3972_s0] sm:$0xff]  ;;  %v95_v1 = vld [vmem:[%s3972_s0 + $0x10] sm:$0xff]  ;;  %v3032_v43 = vmov 0.0  }
  0x4d   :  { %v94_v2 = vld [vmem:[%s3972_s0 + $0x8] sm:$0xff]  ;;  %v102_v3 = vsel %vm101_vm0, %v93_v0, 0.0  ;;  %v108_v4 = vsel %vm101_vm0, %v95_v1, 0.0  ;;  %v96_v5 = vld [vmem:[%s3972_s0 + $0x18] sm:$0xff]  ;;  %v97_v6 = vld [vmem:[%s3972_s0 + $0x20] sm:$0xff]  ;;  %2439 = vmatprep.subr.bf16.mxu1 %v3032_v43  ;;  %vm3033_vm1 = vmmov 0  }
  0x4e   :  { %v98_v7 = vld [vmem:[%s3972_s0 + $0x28] sm:$0xff]  ;;  %103 = vadd.xlane.f32.xlu0 %v102_v3  ;;  %109 = vadd.xlane.f32.xlu1 %v108_v4  ;;  %v105_v8 = vsel %vm101_vm0, %v94_v2, 0.0  ;;  %v111_v9 = vsel %vm101_vm0, %v96_v5, 0.0  ;;  %v114_v10 = vsel %vm101_vm0, %v97_v6, 0.0  ;;  %v2758_v42 = vld [vmem:[%s3975_s3] sm:$0xff]   ;;  %vm379_vm2 = vcmask 64512  }
  0x4f   :  { %v117_v11 = vsel %vm101_vm0, %v98_v7, 0.0  ;;  %2443 = vmatprep.mubr.msk.bf16.mxu1 %vm3033_vm1, %v3032_v43  ;;  %2440 = vmatpush3.bf16.msra.mxu1 %v2758_v42  ;;  %v2759_v44 = vld [vmem:[%s3975_s3 + $0x8] sm:$0xff]   ;;  %s3036_s7 = smov 104   ;;  %s3037_s18 = smov 96   ;;  %vm1223_vm3 = vcmask 1043456   ;;  %vm931_vm5 = vcmask 195584  }
  0x50   :  { %2441 = vmatprep.subr.bf16.mxu1 %v3032_v43  ;;  %s3038_s24 = smov 64   ;;  %s3039_s25 = smov 8   ;;  %vm1787_vm6 = vcmask 130048  }
  0x51   :  { %s3040_s4 = smov 16   ;;  %s3041_s20 = smov 24  }
  0x52   :  { %106 = vadd.xlane.f32.xlu0 %v105_v8  ;;  %112 = vadd.xlane.f32.xlu1 %v111_v9 }
  0x53   :  { %2442 = vmatpush3.bf16.msra.mxu1 %v2759_v44 }
  0x56   :  { %115 = vadd.xlane.f32.xlu0 %v114_v10  ;;  %118 = vadd.xlane.f32.xlu1 %v117_v11 }
  0xdb   :  { %v104_v12 = vpop.xlane.xlu0 %103  ;;  %v110_v13 = vpop.xlane.xlu1 %109 }
  0xdc   :  { %v121_v14 = vmul.f32 0.03125, %v104_v12  ;;  %v123_v15 = vmul.f32 0.03125, %v110_v13 }
  0xde   :  { %v3186_v16 = vsub.f32 %v93_v0, %v121_v14  ;;  %v3188_v17 = vsub.f32 %v95_v1, %v123_v15  ;;  %v2286_v1 = vld [vmem:[%s3973_s1] ss:$0 sm:$0xff]  ;;  %s3034_s1 = smov 120  }
  0xdf   :  { %v107_v18 = vpop.xlane.xlu0 %106  ;;  %v113_v19 = vpop.xlane.xlu1 %112 }
  0xe0   :  { %v122_v20 = vmul.f32 0.03125, %v107_v18  ;;  %v124_v21 = vmul.f32 0.03125, %v113_v19  ;;  %v133_v22 = vmul.f32 %v3186_v16, %v3186_v16  ;;  %v135_v23 = vmul.f32 %v3188_v17, %v3188_v17 }
  0xe2   :  { %v128_v24 = vsub.f32 %v94_v2, %v122_v20  ;;  %v3194_v25 = vsub.f32 %v96_v5, %v124_v21  ;;  %v139_v26 = vsel %vm101_vm0, %v133_v22, 0.0  ;;  %v145_v29 = vsel %vm101_vm0, %v135_v23, 0.0 }
  0xe3   :  { %140 = vadd.xlane.f32.xlu0 %v139_v26  ;;  %v116_v27 = vpop.xlane.xlu0 %115  ;;  %v119_v28 = vpop.xlane.xlu1 %118 }
  0xe4   :  { %v125_v30 = vmul.f32 0.03125, %v116_v27  ;;  %v126_v31 = vmul.f32 0.03125, %v119_v28  ;;  %v134_v32 = vmul.f32 %v128_v24, %v128_v24  ;;  %v136_v33 = vmul.f32 %v3194_v25, %v3194_v25  ;;  %v2288_v28 = vld [vmem:[#allocation2] ss:$0 sm:$0xff] }
  0xe6   :  { %v3200_v34 = vsub.f32 %v97_v6, %v125_v30  ;;  %v3202_v35 = vsub.f32 %v98_v7, %v126_v31  ;;  %v142_v36 = vsel %vm101_vm0, %v134_v32, 0.0  ;;  %v148_v37 = vsel %vm101_vm0, %v136_v33, 0.0  ;;  %v2287_v6 = vld [vmem:[%s3974_s2] ss:$0 sm:$0xff]  ;;  %s3035_s2 = smov 112  }
  0xe7   :  { %146 = vadd.xlane.f32.xlu0 %v145_v29  ;;  %143 = vadd.xlane.f32.xlu1 %v142_v36 }
  0xe8   :  { %v137_v38 = vmul.f32 %v3200_v34, %v3200_v34  ;;  %v138_v39 = vmul.f32 %v3202_v35, %v3202_v35 }
  0xea   :  { %v151_v40 = vsel %vm101_vm0, %v137_v38, 0.0  ;;  %v154_v41 = vsel %vm101_vm0, %v138_v39, 0.0 }
  0xeb   :  { %149 = vadd.xlane.f32.xlu1 %v148_v37  ;;  %152 = vadd.xlane.f32.xlu0 %v151_v40 }
  0xef   :  { %155 = vadd.xlane.f32.xlu1 %v154_v41 }
 0x170   :  { %v141_v45 = vpop.xlane.xlu0 %140 }
 0x171   :  { %v157_v46 = vmul.f32 0.03125, %v141_v45 }
 0x173   :  { %v163_v47 = vadd.f32 1e-05, %v157_v46 }
 0x174   :  { %v144_v48 = vpop.xlane.xlu1 %143  ;;  %v147_v49 = vpop.xlane.xlu0 %146 }
 0x175   :  { %2772 = vrsqrt.f32 %v163_v47  ;;  %v158_v50 = vmul.f32 0.03125, %v144_v48  ;;  %v159_v51 = vmul.f32 0.03125, %v147_v49 }
 0x177   :  { %v164_v52 = vadd.f32 1e-05, %v158_v50  ;;  %v165_v53 = vadd.f32 1e-05, %v159_v51 }
 0x178   :  { %v150_v54 = vpop.xlane.xlu1 %149  ;;  %v153_v55 = vpop.xlane.xlu0 %152 }
 0x179   :  { %2774 = vrsqrt.f32 %v164_v52  ;;  %v160_v56 = vmul.f32 0.03125, %v150_v54  ;;  %v161_v58 = vmul.f32 0.03125, %v153_v55 }
 0x17a   :  { %2776 = vrsqrt.f32 %v165_v53 }
 0x17b   :  { %v166_v57 = vadd.f32 1e-05, %v160_v56  ;;  %v167_v62 = vadd.f32 1e-05, %v161_v58 }
 0x17c   :  { %v156_v59 = vpop.xlane.xlu1 %155 }
 0x17d   :  { %2778 = vrsqrt.f32 %v166_v57  ;;  %v162_v60 = vmul.f32 0.03125, %v156_v59 }
 0x17f   :  { %v2773_v61 = vpop.eup %2772  ;;  %v168_v63 = vadd.f32 1e-05, %v162_v60 }
 0x180   :  { %v175_v0 = vmul.f32 %v2773_v61, %v3186_v16 }
 0x181   :  { %2780 = vrsqrt.f32 %v168_v63 }
 0x182   :  { %2782 = vrsqrt.f32 %v167_v62  ;;  %v187_v4 = vmul.f32 %v2286_v1, %v175_v0 }
 0x183   :  { %v2775_v2 = vpop.eup %2774 }
 0x184   :  { %v176_v3 = vmul.f32 %v2775_v2, %v128_v24  ;;  %v2777_v5 = vpop.eup %2776  ;;  %v199_v9 = vadd.f32 %v2287_v6, %v187_v4 }
 0x185   :  { %v177_v11 = vmul.f32 %v2777_v5, %v3188_v17 }
 0x186   :  { %v188_v7 = vmul.f32 %v2286_v1, %v176_v3 }
 0x187   :  { %v2779_v8 = vpop.eup %2778  ;;  %v189_v16 = vmul.f32 %v2286_v1, %v177_v11 }
 0x188   :  { %v200_v10 = vadd.f32 %v2287_v6, %v188_v7  ;;  %v178_v12 = vmul.f32 %v2779_v8, %v3194_v25 }
 0x189   :  { %v201_v21 = vadd.f32 %v2287_v6, %v189_v16 }
 0x18a   :  { %v205_v13 = vpack.c.bf16 %v200_v10, %v199_v9  ;;  %v190_v14 = vmul.f32 %v2286_v1, %v178_v12 }
 0x18b   :  { %v2781_v15 = vpop.eup %2780 }
 0x18c   :  { %2444 = vmatmul.mubr.msk.bf16.vlgmr.msra.gmra.mrb[0].mxu1 %vm101_vm0, %v205_v13  ;;  %v2783_v18 = vpop.eup %2782  ;;  %v202_v19 = vadd.f32 %v2287_v6, %v190_v14  ;;  %v180_v20 = vmul.f32 %v2781_v15, %v3202_v35 }
 0x18d   :  { %2447 = vmatprep.mubr.msk.bf16.mxu1 %vm3033_vm1, %v3032_v43  ;;  %v179_v22 = vmul.f32 %v2783_v18, %v3200_v34 }
 0x18e   :  { %v206_v23 = vpack.c.bf16 %v202_v19, %v201_v21  ;;  %v192_v17 = vmul.f32 %v2286_v1, %v180_v20 }
 0x18f   :  { %v191_v24 = vmul.f32 %v2286_v1, %v179_v22 }
 0x190   :  { %v204_v25 = vadd.f32 %v2287_v6, %v192_v17 }
 0x191   :  { %v203_v26 = vadd.f32 %v2287_v6, %v191_v24 }
 0x193   :  { %v207_v27 = vpack.c.bf16 %v204_v25, %v203_v26 }
 0x194   :  { %2448 = vmatmul.mubr.msk.bf16.gmra.mrb[4].mxu1 %vm101_vm0, %v206_v23 }
 0x195   :  { %2451 = vmatprep.mubr.msk.bf16.mxu1 %vm3033_vm1, %v3032_v43 }
 0x19c   :  { %2452 = vmatmul.mubr.msk.bf16.gmra.mrb[8].mxu1 %vm101_vm0, %v207_v27 }
 0x25f   :  { %v274_v29 = vpop.f32.mrb[0].mxu1 }
 0x260   :  { %v2445_v30 = vpop.f32.mrb[1].mxu1  ;;  %v275_v32 = vadd.f32 %v2288_v28, %v274_v29 }
 0x261   :  { %v277_v31 = vpop.f32.mrb[2].mxu1 }
 0x262   :  { %v278_v33 = vadd.f32 %v2288_v28, %v277_v31  ;;  %v2446_v34 = vpop.f32.mrb[3].mxu1 }
 0x264   :  { %v2683_v35 = vpack.i.bf16 %v278_v33, %v275_v32  ;;  %v3240_v36 = vpack.c.bf16 %v278_v33, %v275_v32 }
 0x266   :  { %2684 = vrot.lane.b32.xlu0 %v2683_v35, %s3034_s1  ;;  %2459 = vmatprep.mubr.msk.bf16.mxu1 %vm379_vm2, %v3240_v36 }
 0x267   :  { %v282_v37 = vpop.f32.mrb[4].mxu1 }
 0x268   :  { %v2449_v38 = vpop.f32.mrb[5].mxu1  ;;  %v283_v40 = vadd.f32 %v2288_v28, %v282_v37 }
 0x269   :  { %v285_v39 = vpop.f32.mrb[6].mxu1 }
 0x26a   :  { %v286_v41 = vadd.f32 %v2288_v28, %v285_v39  ;;  %v2450_v42 = vpop.f32.mrb[7].mxu1  ;;  %v3252_v52 = vpack.c.bf16 %v283_v40, %v283_v40 }
 0x26c   :  { %v2688_v44 = vpack.i.bf16 %v286_v41, %v283_v40 }
 0x26e   :  { %2689 = vrot.lane.b32.xlu1 %v2688_v44, %s3034_s1 }
 0x26f   :  { %v290_v45 = vpop.f32.mrb[8].mxu1 }
 0x270   :  { %v291_v46 = vadd.f32 %v2288_v28, %v290_v45  ;;  %v2453_v47 = vpop.f32.mrb[9].mxu1 }
 0x271   :  { %v293_v48 = vpop.f32.mrb[10].mxu1 }
 0x272   :  { %v294_v49 = vadd.f32 %v2288_v28, %v293_v48  ;;  %311 = vrot.lane.b32.xlu1 %v291_v46, %s3034_s1  ;;  %v2454_v50 = vpop.f32.mrb[11].mxu1  ;;  %v3244_v51 = vpack.c.bf16 %v291_v46, %v286_v41 }
 0x274   :  { %2467 = vmatprep.mubr.msk.bf16.mxu0 %vm379_vm2, %v3244_v51  ;;  %313 = vrot.lane.b32.xlu0 %v294_v49, %s3034_s1  ;;  %v3256_v53 = vpack.c.bf16 %v294_v49, %v294_v49 }
 0x276   :  { %2694 = vrot.lane.b32.xlu1 %v2683_v35, %s3035_s2 }
 0x278   :  { %329 = vrot.lane.b32.xlu0 %v291_v46, %s3035_s2 }
 0x27a   :  { %2699 = vrot.lane.b32.xlu1 %v2688_v44, %s3035_s2 }
 0x27c   :  { %331 = vrot.lane.b32.xlu0 %v294_v49, %s3035_s2 }
 0x27e   :  { %2704 = vrot.lane.b32.xlu1 %v2683_v35, %s3036_s7 }
 0x280   :  { %347 = vrot.lane.b32.xlu0 %v291_v46, %s3036_s7 }
 0x282   :  { %2709 = vrot.lane.b32.xlu1 %v2688_v44, %s3036_s7 }
 0x284   :  { %349 = vrot.lane.b32.xlu0 %v294_v49, %s3036_s7 }
 0x286   :  { %375 = vrot.lane.b32.xlu1 %v3240_v36, %s3037_s18 }
 0x288   :  { %442 = vrot.lane.b32.xlu0 %v3244_v51, %s3037_s18 }
 0x28a   :  { %377 = vrot.lane.b32.xlu1 %v3252_v52, %s3037_s18 }
 0x28c   :  { %444 = vrot.lane.b32.xlu0 %v3256_v53, %s3037_s18 }
 0x2d8   :  { %v2685_v54 = vpop.permute.xlu0 %2684 }
 0x2d9   :  { %v2687_v55 = vunpack.i.h.bf16 %v2685_v54  ;;  %v2686_v56 = vunpack.i.l.bf16 %v2685_v54 }
 0x2db   :  { %v3260_v57 = vpack.c.bf16 %v2687_v55, %v2686_v56 }
 0x2dd   :  { %508 = vrot.lane.b32.xlu1 %v3260_v57, %s3037_s18 }
 0x2e0   :  { %v2690_v58 = vpop.permute.xlu1 %2689 }
 0x2e1   :  { %v2691_v59 = vunpack.i.l.bf16 %v2690_v58  ;;  %v2692_v60 = vunpack.i.h.bf16 %v2690_v58 }
 0x2e3   :  { %v3264_v61 = vpack.c.bf16 %v2691_v59, %v2691_v59 }
 0x2e4   :  { %v312_v62 = vpop.permute.xlu1 %311 }
 0x2e5   :  { %v3266_v63 = vpack.c.bf16 %v312_v62, %v2692_v60  ;;  %510 = vrot.lane.b32.xlu1 %v3264_v61, %s3037_s18 }
 0x2e6   :  { %v314_v0 = vpop.permute.xlu0 %313 }
 0x2e7   :  { %574 = vrot.lane.b32.xlu0 %v3266_v63, %s3037_s18  ;;  %v3272_v2 = vpack.c.bf16 %v314_v0, %v314_v0 }
 0x2e8   :  { %v2695_v1 = vpop.permute.xlu1 %2694 }
 0x2e9   :  { %v2697_v3 = vunpack.i.h.bf16 %v2695_v1  ;;  %v2696_v4 = vunpack.i.l.bf16 %v2695_v1 }
 0x2ea   :  { %v330_v5 = vpop.permute.xlu0 %329 }
 0x2eb   :  { %576 = vrot.lane.b32.xlu0 %v3272_v2, %s3037_s18  ;;  %v3276_v6 = vpack.c.bf16 %v2697_v3, %v2696_v4  ;;  %v902_v3 = vlaneseq }
 0x2ec   :  { %v2700_v7 = vpop.permute.xlu1 %2699 }
 0x2ed   :  { %v2702_v8 = vunpack.i.h.bf16 %v2700_v7  ;;  %v2701_v9 = vunpack.i.l.bf16 %v2700_v7  ;;  %640 = vrot.lane.b32.xlu1 %v3276_v6, %s3037_s18  ;;  %v3402_v4 = vand.u32 127, %v902_v3 }
 0x2ee   :  { %v332_v10 = vpop.permute.xlu0 %331 }
 0x2ef   :  { %v3280_v11 = vpack.c.bf16 %v330_v5, %v2702_v8  ;;  %v3282_v12 = vpack.c.bf16 %v2701_v9, %v2701_v9  ;;  %v3288_v18 = vpack.c.bf16 %v332_v10, %v332_v10  ;;  %vm904_vm4 = vcmp.lt.s32.totalorder %v3402_v4, 18 }
 0x2f0   :  { %v2705_v13 = vpop.permute.xlu1 %2704 }
 0x2f1   :  { %v2707_v14 = vunpack.i.h.bf16 %v2705_v13  ;;  %v2706_v15 = vunpack.i.l.bf16 %v2705_v13  ;;  %706 = vrot.lane.b32.xlu0 %v3280_v11, %s3037_s18  ;;  %642 = vrot.lane.b32.xlu1 %v3282_v12, %s3037_s18 }
 0x2f2   :  { %v348_v16 = vpop.permute.xlu0 %347 }
 0x2f3   :  { %v3290_v19 = vpack.c.bf16 %v2707_v14, %v2706_v15 }
 0x2f4   :  { %v2710_v20 = vpop.permute.xlu1 %2709 }
 0x2f5   :  { %v2712_v21 = vunpack.i.h.bf16 %v2710_v20  ;;  %v2711_v22 = vunpack.i.l.bf16 %v2710_v20  ;;  %708 = vrot.lane.b32.xlu0 %v3288_v18, %s3037_s18  ;;  %772 = vrot.lane.b32.xlu1 %v3290_v19, %s3037_s18 }
 0x2f6   :  { %v350_v23 = vpop.permute.xlu0 %349 }
 0x2f7   :  { %v3296_v17 = vpack.c.bf16 %v348_v16, %v2712_v21  ;;  %v3298_v24 = vpack.c.bf16 %v2711_v22, %v2711_v22  ;;  %v3308_v29 = vpack.c.bf16 %v350_v23, %v350_v23 }
 0x2f8   :  { %v376_v25 = vpop.permute.xlu1 %375 }
 0x2f9   :  { %2643 = vmatprep.subr.msk.bf16.mxu1 %vm379_vm2, %v376_v25  ;;  %838 = vrot.lane.b32.xlu0 %v3296_v17, %s3037_s18  ;;  %v387_v26 = vsel %vm379_vm2, %v376_v25, 0 }
 0x2fa   :  { %774 = vrot.lane.b32.xlu1 %v3298_v24, %s3037_s18  ;;  %2456 = vmatpush3.bf16.xpose.msra.mxu1 %v387_v26  ;;  %v443_v27 = vpop.permute.xlu0 %442 }
 0x2fb   :  { %2645 = vmatprep.subr.msk.bf16.mxu0 %vm379_vm2, %v443_v27  ;;  %v453_v28 = vsel %vm379_vm2, %v443_v27, 0 }
 0x2fc   :  { %v378_v30 = vpop.permute.xlu1 %377  ;;  %2464 = vmatpush3.bf16.xpose.msra.mxu0 %v453_v28 }
 0x2fd   :  { %2644 = vmatprep.subr.msk.bf16.mxu1 %vm379_vm2, %v378_v30  ;;  %1337 = vrot.lane.b32.xlu0 %v3260_v57, %s3038_s24  ;;  %v390_v32 = vsel %vm379_vm2, %v378_v30, 0 }
 0x2fe   :  { %840 = vrot.lane.b32.xlu1 %v3308_v29, %s3037_s18  ;;  %v445_v31 = vpop.permute.xlu0 %444 }
 0x2ff   :  { %2646 = vmatprep.subr.msk.bf16.mxu0 %vm379_vm2, %v445_v31  ;;  %v456_v33 = vsel %vm379_vm2, %v445_v31, 0 }
 0x301   :  { %1277 = vrot.lane.b32.xlu0 %v3256_v53, %s3038_s24 }
 0x302   :  { %1212 = vrot.lane.b32.xlu1 %v3240_v36, %s3038_s24  ;;  %2458 = vmatpush3.bf16.xpose.msra.mxu1 %v390_v32 }
 0x304   :  { %2466 = vmatpush3.bf16.xpose.msra.mxu0 %v456_v33 }
 0x306   :  { %1214 = vrot.lane.b32.xlu1 %v3252_v52, %s3038_s24 }
 0x309   :  { %2460 = vmatmul.mubr.msk.bf16.vlgmr.msra.gmra.mrb[12].mxu1 %vm379_vm2, %v3252_v52 }
 0x30a   :  { %1275 = vrot.lane.b32.xlu1 %v3244_v51, %s3038_s24  ;;  %2475 = vmatprep.mubr.msk.bf16.mxu1 %vm379_vm2, %v3260_v57 }
 0x30b   :  { %2468 = vmatmul.mubr.msk.bf16.vlgmr.msra.gmra.mrb[0].mxu0 %vm379_vm2, %v3256_v53 }
 0x30c   :  { %2483 = vmatprep.mubr.msk.bf16.mxu0 %vm379_vm2, %v3266_v63 }
 0x30e   :  { %1339 = vrot.lane.b32.xlu1 %v3264_v61, %s3038_s24 }
 0x312   :  { %1461 = vrot.lane.b32.xlu1 %v3276_v6, %s3038_s24 }
 0x316   :  { %1399 = vrot.lane.b32.xlu1 %v3266_v63, %s3038_s24 }
 0x31a   :  { %1463 = vrot.lane.b32.xlu1 %v3282_v12, %s3038_s24 }
 0x31e   :  { %1585 = vrot.lane.b32.xlu1 %v3290_v19, %s3038_s24 }
 0x322   :  { %1523 = vrot.lane.b32.xlu1 %v3280_v11, %s3038_s24 }
 0x326   :  { %1401 = vrot.lane.b32.xlu1 %v3272_v2, %s3038_s24 }
 0x34f   :  { %v509_v34 = vpop.permute.xlu1 %508 }
 0x350   :  { %v519_v35 = vsel %vm379_vm2, %v509_v34, 0  ;;  %2647 = vmatprep.subr.msk.bf16.mxu1 %vm379_vm2, %v509_v34 }
 0x351   :  { %2472 = vmatpush3.bf16.xpose.msra.mxu1 %v519_v35 }
 0x357   :  { %v511_v36 = vpop.permute.xlu1 %510 }
 0x358   :  { %v522_v37 = vsel %vm379_vm2, %v511_v36, 0  ;;  %2648 = vmatprep.subr.msk.bf16.mxu1 %vm379_vm2, %v511_v36 }
 0x359   :  { %v575_v38 = vpop.permute.xlu0 %574  ;;  %2474 = vmatpush3.bf16.xpose.msra.mxu1 %v522_v37 }
 0x35a   :  { %v585_v39 = vsel %vm379_vm2, %v575_v38, 0  ;;  %2649 = vmatprep.subr.msk.bf16.mxu0 %vm379_vm2, %v575_v38 }
 0x35b   :  { %2480 = vmatpush3.bf16.xpose.msra.mxu0 %v585_v39 }
 0x35d   :  { %v577_v40 = vpop.permute.xlu0 %576 }
 0x35e   :  { %2650 = vmatprep.subr.msk.bf16.mxu0 %vm379_vm2, %v577_v40  ;;  %v588_v44 = vsel %vm379_vm2, %v577_v40, 0 }
 0x35f   :  { %v641_v41 = vpop.permute.xlu1 %640 }
 0x360   :  { %v651_v42 = vsel %vm379_vm2, %v641_v41, 0  ;;  %2476 = vmatmul.mubr.msk.bf16.vlgmr.msra.gmra.mrb[16].mxu1 %vm379_vm2, %v3264_v61  ;;  %2651 = vmatprep.subr.msk.bf16.mxu1 %vm379_vm2, %v641_v41 }
 0x361   :  { %2488 = vmatpush3.bf16.xpose.msra.mxu1 %v651_v42  ;;  %2491 = vmatprep.mubr.msk.bf16.mxu1 %vm379_vm2, %v3276_v6 }
 0x363   :  { %2482 = vmatpush3.bf16.xpose.msra.mxu0 %v588_v44  ;;  %v707_v45 = vpop.permute.xlu0 %706  ;;  %v643_v46 = vpop.permute.xlu1 %642 }
 0x364   :  { %2652 = vmatprep.subr.msk.bf16.mxu1 %vm379_vm2, %v643_v46  ;;  %2653 = vmatprep.subr.msk.bf16.mxu0 %vm379_vm2, %v707_v45  ;;  %v654_v48 = vsel %vm379_vm2, %v643_v46, 0  ;;  %v717_v49 = vsel %vm379_vm2, %v707_v45, 0 }
 0x367   :  { %v773_v47 = vpop.permute.xlu1 %772  ;;  %v709_v50 = vpop.permute.xlu0 %708 }
 0x368   :  { %v783_v52 = vsel %vm379_vm2, %v773_v47, 0  ;;  %v720_v54 = vsel %vm379_vm2, %v709_v50, 0 }
 0x369   :  { %2490 = vmatpush3.bf16.xpose.msra.mxu1 %v654_v48 }
 0x36a   :  { %2484 = vmatmul.mubr.msk.bf16.vlgmr.msra.gmra.mrb[4].mxu0 %vm379_vm2, %v3272_v2  ;;  %2655 = vmatprep.subr.msk.bf16.mxu1 %vm379_vm2, %v773_v47 }
 0x36b   :  { %2496 = vmatpush3.bf16.xpose.msra.mxu0 %v717_v49  ;;  %2499 = vmatprep.mubr.msk.bf16.mxu0 %vm379_vm2, %v3280_v11  ;;  %v839_v55 = vpop.permute.xlu0 %838 }
 0x36c   :  { %v775_v51 = vpop.permute.xlu1 %774  ;;  %2654 = vmatprep.subr.msk.bf16.mxu0 %vm379_vm2, %v709_v50  ;;  %v849_v58 = vsel %vm379_vm2, %v839_v55, 0 }
 0x36d   :  { %v786_v57 = vsel %vm379_vm2, %v775_v51, 0 }
 0x36f   :  { %v1338_v61 = vpop.permute.xlu0 %1337 }
 0x370   :  { %2492 = vmatmul.mubr.msk.bf16.vlgmr.msra.gmra.mrb[20].mxu1 %vm379_vm2, %v3282_v12  ;;  %v841_v53 = vpop.permute.xlu1 %840 }
 0x371   :  { %2504 = vmatpush3.bf16.xpose.msra.mxu1 %v783_v52  ;;  %2507 = vmatprep.mubr.msk.bf16.mxu1 %vm379_vm2, %v3290_v19  ;;  %v852_v60 = vsel %vm379_vm2, %v841_v53, 0 }
 0x372   :  { %2656 = vmatprep.subr.msk.bf16.mxu1 %vm379_vm2, %v775_v51 }
 0x373   :  { %2498 = vmatpush3.bf16.xpose.msra.mxu0 %v720_v54 }
 0x374   :  { %2657 = vmatprep.subr.msk.bf16.mxu0 %vm379_vm2, %v839_v55  ;;  %v1213_v56 = vpop.permute.xlu1 %1212 }
 0x378   :  { %v1215_v59 = vpop.permute.xlu1 %1214 }
 0x379   :  { %2506 = vmatpush3.bf16.xpose.msra.mxu1 %v786_v57  ;;  %v1225_v63 = vsel %vm1223_vm3, %v1215_v59, 0 }
 0x37a   :  { %2500 = vmatmul.mubr.msk.bf16.vlgmr.msra.gmra.mrb[8].mxu0 %vm379_vm2, %v3288_v18  ;;  %2519 = vmatprep.subr.bf16.mxu1 %v1213_v56 }
 0x37b   :  { %2512 = vmatpush3.bf16.xpose.msra.mxu0 %v849_v58  ;;  %2515 = vmatprep.mubr.msk.bf16.mxu0 %vm379_vm2, %v3296_v17 }
 0x37c   :  { %2658 = vmatprep.subr.msk.bf16.mxu0 %vm379_vm2, %v841_v53  ;;  %v3391_v62 = vpop.permute.xlu1 %1275 }
 0x380   :  { %2508 = vmatmul.mubr.msk.bf16.vlgmr.msra.gmra.mrb[24].mxu1 %vm379_vm2, %v3298_v24  ;;  %v1340_v0 = vpop.permute.xlu1 %1339 }
 0x381   :  { %2520 = vmatpush3.bf16.msra.mxu1 %v1213_v56  ;;  %v1349_v1 = vsel %vm1223_vm3, %v1340_v0, 0 }
 0x382   :  { %2659 = vmatprep.subr.msk.bf16.mxu1 %vm1223_vm3, %v1215_v59 }
 0x383   :  { %2514 = vmatpush3.bf16.xpose.msra.mxu0 %v852_v60 }
 0x384   :  { %2535 = vmatprep.subr.bf16.mxu0 %v1338_v61  ;;  %v3399_v2 = vpop.permute.xlu1 %1461 }
 0x385   :  { %2522 = vmatpush3.bf16.msra.mxu1 %v1225_v63 }
 0x386   :  { %2527 = vmatprep.subr.bf16.mxu1 %v3391_v62 }
 0x38a   :  { %2516 = vmatmul.mubr.msk.bf16.vlgmr.msra.gmra.mrb[12].mxu0 %vm379_vm2, %v3308_v29 }
 0x38b   :  { %2536 = vmatpush3.bf16.msra.mxu0 %v1338_v61 }
 0x38c   :  { %2661 = vmatprep.subr.msk.bf16.mxu0 %vm1223_vm3, %v1340_v0 }
 0x38f   :  { %2538 = vmatpush3.bf16.msra.mxu0 %v1349_v1 }
 0x390   :  { %2551 = vmatprep.subr.bf16.mxu0 %v3399_v2 }
 0x3dc   :  { %v2461_v5 = vpop.f32.mrb[12].mxu1 }
 0x3dd   :  { %v3407_v6 = vsel %vm904_vm4, %v2461_v5, -1e+30  ;;  %v426_v7 = vpop.f32.mrb[13].mxu1 }
 0x3de   :  { %v2462_v8 = vpop.f32.mrb[14].mxu1  ;;  %v2469_v9 = vpop.f32.mrb[0].mxu0  ;;  %v938_v10 = vsel %vm931_vm5, %v3407_v6, -inf  ;;  %v3413_v11 = vsel %vm904_vm4, %v426_v7, -1e+30 }
 0x3df   :  { %v429_v12 = vpop.f32.mrb[15].mxu1  ;;  %v492_v13 = vpop.f32.mrb[1].mxu0  ;;  %939 = vmax.xlane.f32.xlu0 %v938_v10  ;;  %v932_v21 = vsel %vm931_vm5, %v3413_v11, -inf  ;;  %v3429_v22 = vsel %vm904_vm4, %v2469_v9, -1e+30 }
 0x3e0   :  { %v3417_v14 = vsel %vm904_vm4, %v429_v12, -1e+30  ;;  %v2470_v15 = vpop.f32.mrb[2].mxu0  ;;  %v947_v25 = vsel %vm931_vm5, %v3429_v22, -inf  ;;  %v3437_v26 = vsel %vm904_vm4, %v492_v13, -1e+30  ;;  %v3505_v7 = vpop.permute.xlu1 %1399 }
 0x3e1   :  { %v495_v16 = vpop.f32.mrb[3].mxu0  ;;  %v935_v19 = vsel %vm931_vm5, %v3417_v14, -inf  ;;  %v941_v27 = vsel %vm931_vm5, %v3437_v26, -inf }
 0x3e2   :  { %v3423_v20 = vsel %vm904_vm4, %v495_v16, -1e+30  ;;  %936 = vmax.xlane.f32.xlu1 %v935_v19 }
 0x3e3   :  { %933 = vmax.xlane.f32.xlu0 %v932_v21  ;;  %v944_v23 = vsel %vm931_vm5, %v3423_v20, -inf }
 0x3e6   :  { %945 = vmax.xlane.f32.xlu1 %v944_v23 }
 0x3e7   :  { %948 = vmax.xlane.f32.xlu0 %v947_v25  ;;  %v3525_v25 = vpop.permute.xlu1 %1463 }
 0x3eb   :  { %942 = vmax.xlane.f32.xlu0 %v941_v27 }
 0x433   :  { %v2477_v28 = vpop.f32.mrb[16].mxu1 }
 0x434   :  { %v3443_v30 = vsel %vm904_vm4, %v2477_v28, -1e+30  ;;  %v558_v31 = vpop.f32.mrb[17].mxu1 }
 0x435   :  { %v3447_v32 = vsel %vm904_vm4, %v558_v31, -1e+30  ;;  %v2478_v33 = vpop.f32.mrb[18].mxu1  ;;  %v956_v34 = vsel %vm931_vm5, %v3443_v30, -inf }
 0x436   :  { %957 = vmax.xlane.f32.xlu1 %v956_v34  ;;  %v561_v35 = vpop.f32.mrb[19].mxu1  ;;  %v950_v36 = vsel %vm931_vm5, %v3447_v32, -inf }
 0x437   :  { %v3455_v37 = vsel %vm904_vm4, %v561_v35, -1e+30  ;;  %951 = vmax.xlane.f32.xlu0 %v950_v36  ;;  %v3539_v36 = vpop.permute.xlu1 %1585 }
 0x438   :  { %v953_v38 = vsel %vm931_vm5, %v3455_v37, -inf }
 0x43b   :  { %954 = vmax.xlane.f32.xlu0 %v953_v38 }
 0x43d   :  { %v2485_v39 = vpop.f32.mrb[4].mxu0 }
 0x43e   :  { %v3461_v40 = vsel %vm904_vm4, %v2485_v39, -1e+30  ;;  %v624_v41 = vpop.f32.mrb[5].mxu0 }
 0x43f   :  { %v2486_v42 = vpop.f32.mrb[6].mxu0  ;;  %v965_v44 = vsel %vm931_vm5, %v3461_v40, -inf  ;;  %v3467_v45 = vsel %vm904_vm4, %v624_v41, -1e+30 }
 0x440   :  { %v627_v46 = vpop.f32.mrb[7].mxu0  ;;  %966 = vmax.xlane.f32.xlu0 %v965_v44  ;;  %v959_v48 = vsel %vm931_vm5, %v3467_v45, -inf  ;;  %v3543_v42 = vpop.permute.xlu1 %1523 }
 0x441   :  { %v3491_v58 = vsel %vm904_vm4, %v627_v46, -1e+30  ;;  %v3545_v44 = vpop.permute.xlu0 %1277 }
 0x442   :  { %v962_v60 = vsel %vm931_vm5, %v3491_v58, -inf }
 0x443   :  { %v2493_v47 = vpop.f32.mrb[20].mxu1 }
 0x444   :  { %v3473_v49 = vsel %vm904_vm4, %v2493_v47, -1e+30  ;;  %960 = vmax.xlane.f32.xlu0 %v959_v48  ;;  %v690_v50 = vpop.f32.mrb[21].mxu1  ;;  %v3547_v46 = vpop.permute.xlu1 %1401 }
 0x445   :  { %v2494_v51 = vpop.f32.mrb[22].mxu1  ;;  %v974_v52 = vsel %vm931_vm5, %v3473_v49, -inf  ;;  %v3479_v53 = vsel %vm904_vm4, %v690_v50, -1e+30 }
 0x446   :  { %975 = vmax.xlane.f32.xlu1 %v974_v52  ;;  %v693_v54 = vpop.f32.mrb[23].mxu1  ;;  %v968_v57 = vsel %vm931_vm5, %v3479_v53, -inf }
 0x447   :  { %v3483_v55 = vsel %vm904_vm4, %v693_v54, -1e+30 }
 0x448   :  { %v971_v56 = vsel %vm931_vm5, %v3483_v55, -inf }
 0x449   :  { %972 = vmax.xlane.f32.xlu0 %v971_v56 }
 0x44a   :  { %969 = vmax.xlane.f32.xlu1 %v968_v57 }
 0x44d   :  { %v2501_v59 = vpop.f32.mrb[8].mxu0 }
 0x44e   :  { %v3497_v61 = vsel %vm904_vm4, %v2501_v59, -1e+30  ;;  %v756_v63 = vpop.f32.mrb[9].mxu0  ;;  %963 = vmax.xlane.f32.xlu1 %v962_v60 }
 0x44f   :  { %v2502_v0 = vpop.f32.mrb[10].mxu0  ;;  %v983_v1 = vsel %vm931_vm5, %v3497_v61, -inf  ;;  %v3503_v3 = vsel %vm904_vm4, %v756_v63, -1e+30 }
 0x450   :  { %v759_v5 = vpop.f32.mrb[11].mxu0  ;;  %984 = vmax.xlane.f32.xlu0 %v983_v1  ;;  %v977_v9 = vsel %vm931_vm5, %v3503_v3, -inf }
 0x451   :  { %v3531_v28 = vsel %vm904_vm4, %v759_v5, -1e+30 }
 0x452   :  { %v980_v33 = vsel %vm931_vm5, %v3531_v28, -inf }
 0x453   :  { %v2509_v8 = vpop.f32.mrb[24].mxu1 }
 0x454   :  { %v3511_v10 = vsel %vm904_vm4, %v2509_v8, -1e+30  ;;  %978 = vmax.xlane.f32.xlu0 %v977_v9  ;;  %v822_v12 = vpop.f32.mrb[25].mxu1 }
 0x455   :  { %v2510_v13 = vpop.f32.mrb[26].mxu1  ;;  %v992_v15 = vsel %vm931_vm5, %v3511_v10, -inf  ;;  %v3517_v16 = vsel %vm904_vm4, %v822_v12, -1e+30 }
 0x456   :  { %993 = vmax.xlane.f32.xlu1 %v992_v15  ;;  %v825_v19 = vpop.f32.mrb[27].mxu1  ;;  %v986_v27 = vsel %vm931_vm5, %v3517_v16, -inf }
 0x457   :  { %v3521_v21 = vsel %vm904_vm4, %v825_v19, -1e+30 }
 0x458   :  { %v989_v23 = vsel %vm931_vm5, %v3521_v21, -inf }
 0x459   :  { %990 = vmax.xlane.f32.xlu0 %v989_v23 }
 0x45a   :  { %987 = vmax.xlane.f32.xlu1 %v986_v27 }
 0x45d   :  { %v2517_v31 = vpop.f32.mrb[12].mxu0 }
 0x45e   :  { %v3537_v34 = vsel %vm904_vm4, %v2517_v31, -1e+30  ;;  %v888_v35 = vpop.f32.mrb[13].mxu0  ;;  %981 = vmax.xlane.f32.xlu1 %v980_v33 }
 0x45f   :  { %v2518_v38 = vpop.f32.mrb[14].mxu0  ;;  %v1001_v41 = vsel %vm931_vm5, %v3537_v34, -inf }
 0x460   :  { %v891_v39 = vpop.f32.mrb[15].mxu0 }
 0x461   :  { %v3570_v5 = vsel %vm904_vm4, %v891_v39, -1e+30 }
 0x462   :  { %1002 = vmax.xlane.f32.xlu1 %v1001_v41  ;;  %v998_v9 = vsel %vm931_vm5, %v3570_v5, -inf }
 0x46c   :  { %v940_v47 = vpop.xlane.xlu0 %939 }
 0x46d   :  { %v1006_v48 = vsub.f32 %v3407_v6, %v940_v47 }
 0x46f   :  { %v1032_v50 = vmul.f32 1.442695, %v1006_v48  ;;  %v937_v51 = vpop.xlane.xlu1 %936 }
 0x470   :  { %v1005_v52 = vsub.f32 %v3417_v14, %v937_v51  ;;  %v934_v54 = vpop.xlane.xlu0 %933 }
 0x471   :  { %2784 = vpow2.f32 %v1032_v50  ;;  %v1004_v56 = vsub.f32 %v3413_v11, %v934_v54  ;;  %v3564_v11 = vsel %vm904_vm4, %v888_v35, -1e+30 }
 0x472   :  { %v1030_v57 = vmul.f32 1.442695, %v1005_v52  ;;  %v995_v8 = vsel %vm931_vm5, %v3564_v11, -inf }
 0x473   :  { %v1028_v59 = vmul.f32 1.442695, %v1004_v56  ;;  %v946_v13 = vpop.xlane.xlu1 %945 }
 0x474   :  { %2786 = vpow2.f32 %v1030_v57  ;;  %v949_v12 = vpop.xlane.xlu0 %948  ;;  %v1008_v4 = vsub.f32 %v3423_v20, %v946_v13 }
 0x475   :  { %2788 = vpow2.f32 %v1028_v59  ;;  %v1009_v15 = vsub.f32 %v3429_v22, %v949_v12 }
 0x476   :  { %v1036_v23 = vmul.f32 1.442695, %v1008_v4 }
 0x477   :  { %v1038_v27 = vmul.f32 1.442695, %v1009_v15 }
 0x478   :  { %v943_v19 = vpop.xlane.xlu0 %942  ;;  %2790 = vpow2.f32 %v1036_v23 }
 0x479   :  { %v1007_v31 = vsub.f32 %v3437_v26, %v943_v19  ;;  %2792 = vpow2.f32 %v1038_v27 }
 0x47b   :  { %v3552_v60 = vpop.eup %2784  ;;  %v1034_v33 = vmul.f32 1.442695, %v1007_v31 }
 0x47c   :  { %v1082_v63 = vsel %vm931_vm5, %v3552_v60, 0.0 }
 0x47d   :  { %1083 = vadd.xlane.f32.xlu0 %v1082_v63  ;;  %2794 = vpow2.f32 %v1034_v33 }
 0x47e   :  { %v3556_v0 = vpop.eup %2786 }
 0x47f   :  { %v3558_v6 = vpop.eup %2788  ;;  %v1079_v14 = vsel %vm931_vm5, %v3556_v0, 0.0 }
 0x480   :  { %1080 = vadd.xlane.f32.xlu1 %v1079_v14  ;;  %v1076_v1 = vsel %vm931_vm5, %v3558_v6, 0.0 }
 0x481   :  { %1077 = vadd.xlane.f32.xlu0 %v1076_v1 }
 0x482   :  { %v3583_v35 = vpop.eup %2790 }
 0x484   :  { %996 = vmax.xlane.f32.xlu1 %v995_v8 }
 0x485   :  { %999 = vmax.xlane.f32.xlu0 %v998_v9 }
 0x495   :  { %1525 = vrot.lane.b32.xlu1 %v3288_v18, %s3038_s24  ;;  %v3585_v18 = vpop.eup %2792 }
 0x496   :  { %v1091_v20 = vsel %vm931_vm5, %v3585_v18, 0.0  ;;  %v3591_v22 = vpop.eup %2794 }
 0x497   :  { %v1085_v26 = vsel %vm931_vm5, %v3591_v22, 0.0 }
 0x49b   :  { %1587 = vrot.lane.b32.xlu0 %v3298_v24, %s3038_s24  ;;  %v1088_v24 = vsel %vm931_vm5, %v3583_v35, 0.0 }
 0x4b9   :  { %1089 = vadd.xlane.f32.xlu1 %v1088_v24 }
 0x4ba   :  { %1092 = vadd.xlane.f32.xlu0 %v1091_v20 }
 0x4be   :  { %1086 = vadd.xlane.f32.xlu0 %v1085_v26 }
 0x4c3   :  { %v958_v38 = vpop.xlane.xlu1 %957 }
 0x4c4   :  { %v1012_v39 = vsub.f32 %v3443_v30, %v958_v38  ;;  %v952_v41 = vpop.xlane.xlu0 %951 }
 0x4c5   :  { %v1010_v47 = vsub.f32 %v3447_v32, %v952_v41 }
 0x4c6   :  { %v1044_v48 = vmul.f32 1.442695, %v1012_v39 }
 0x4c7   :  { %v1040_v50 = vmul.f32 1.442695, %v1010_v47 }
 0x4c8   :  { %2796 = vpow2.f32 %v1044_v48  ;;  %v955_v51 = vpop.xlane.xlu0 %954 }
 0x4c9   :  { %v1011_v52 = vsub.f32 %v3455_v37, %v955_v51  ;;  %2798 = vpow2.f32 %v1040_v50 }
 0x4cb   :  { %v1042_v54 = vmul.f32 1.442695, %v1011_v52 }
 0x4cd   :  { %2800 = vpow2.f32 %v1042_v54  ;;  %v967_v56 = vpop.xlane.xlu0 %966 }
 0x4ce   :  { %v1015_v57 = vsub.f32 %v3461_v40, %v967_v56 }
 0x4d0   :  { %v1050_v59 = vmul.f32 1.442695, %v1015_v57 }
 0x4d1   :  { %v961_v63 = vpop.xlane.xlu0 %960 }
 0x4d2   :  { %v3599_v14 = vpop.eup %2796  ;;  %2802 = vpow2.f32 %v1050_v59  ;;  %v1013_v30 = vsub.f32 %v3467_v45, %v961_v63 }
 0x4d3   :  { %v976_v32 = vpop.xlane.xlu1 %975  ;;  %v1100_v1 = vsel %vm931_vm5, %v3599_v14, 0.0  ;;  %v3604_v8 = vpop.eup %2798 }
 0x4d4   :  { %v1046_v37 = vmul.f32 1.442695, %v1013_v30  ;;  %v1018_v9 = vsub.f32 %v3473_v49, %v976_v32  ;;  %1101 = vadd.xlane.f32.xlu1 %v1100_v1  ;;  %v1094_v45 = vsel %vm931_vm5, %v3604_v8, 0.0 }
 0x4d6   :  { %2804 = vpow2.f32 %v1046_v37  ;;  %v1056_v12 = vmul.f32 1.442695, %v1018_v9  ;;  %v973_v40 = vpop.xlane.xlu0 %972 }
 0x4d7   :  { %v3607_v13 = vpop.eup %2800  ;;  %v1017_v4 = vsub.f32 %v3483_v55, %v973_v40  ;;  %v970_v15 = vpop.xlane.xlu1 %969 }
 0x4d8   :  { %2806 = vpow2.f32 %v1056_v12  ;;  %v1016_v19 = vsub.f32 %v3479_v53, %v970_v15  ;;  %1095 = vadd.xlane.f32.xlu1 %v1094_v45  ;;  %v1097_v23 = vsel %vm931_vm5, %v3607_v13, 0.0 }
 0x4d9   :  { %v1054_v49 = vmul.f32 1.442695, %v1017_v4  ;;  %1098 = vadd.xlane.f32.xlu0 %v1097_v23 }
 0x4da   :  { %v1052_v27 = vmul.f32 1.442695, %v1016_v19 }
 0x4db   :  { %2808 = vpow2.f32 %v1054_v49  ;;  %v964_v31 = vpop.xlane.xlu1 %963 }
 0x4dc   :  { %v3615_v33 = vpop.eup %2802  ;;  %2810 = vpow2.f32 %v1052_v27  ;;  %v1014_v55 = vsub.f32 %v3491_v58, %v964_v31 }
 0x4dd   :  { %v985_v24 = vpop.xlane.xlu0 %984  ;;  %v1109_v20 = vsel %vm931_vm5, %v3615_v33, 0.0 }
 0x4de   :  { %v1048_v26 = vmul.f32 1.442695, %v1014_v55  ;;  %v1021_v53 = vsub.f32 %v3497_v61, %v985_v24  ;;  %1110 = vadd.xlane.f32.xlu0 %v1109_v20 }
 0x4e0   :  { %v3621_v38 = vpop.eup %2804  ;;  %2812 = vpow2.f32 %v1048_v26  ;;  %v1062_v39 = vmul.f32 1.442695, %v1021_v53 }
 0x4e1   :  { %v979_v41 = vpop.xlane.xlu0 %978  ;;  %v1103_v47 = vsel %vm931_vm5, %v3621_v38, 0.0 }
 0x4e2   :  { %v3625_v48 = vpop.eup %2806  ;;  %2814 = vpow2.f32 %v1062_v39  ;;  %v1019_v58 = vsub.f32 %v3503_v3, %v979_v41  ;;  %1104 = vadd.xlane.f32.xlu0 %v1103_v47 }
 0x4e3   :  { %v994_v50 = vpop.xlane.xlu1 %993  ;;  %v1118_v51 = vsel %vm931_vm5, %v3625_v48, 0.0 }
 0x4e4   :  { %v1058_v61 = vmul.f32 1.442695, %v1019_v58  ;;  %v1024_v52 = vsub.f32 %v3511_v10, %v994_v50  ;;  %1119 = vadd.xlane.f32.xlu1 %v1118_v51 }
 0x4e5   :  { %v3631_v54 = vpop.eup %2808 }
 0x4e6   :  { %v3633_v56 = vpop.eup %2810  ;;  %2816 = vpow2.f32 %v1058_v61  ;;  %v1068_v57 = vmul.f32 1.442695, %v1024_v52  ;;  %v1115_v59 = vsel %vm931_vm5, %v3631_v54, 0.0  ;;  %v991_v63 = vpop.xlane.xlu0 %990 }
 0x4e7   :  { %v988_v3 = vpop.xlane.xlu1 %987  ;;  %1116 = vadd.xlane.f32.xlu0 %v1115_v59  ;;  %v1112_v30 = vsel %vm931_vm5, %v3633_v56, 0.0  ;;  %v1023_v1 = vsub.f32 %v3521_v21, %v991_v63 }
 0x4e8   :  { %2818 = vpow2.f32 %v1068_v57  ;;  %v1022_v32 = vsub.f32 %v3517_v16, %v988_v3  ;;  %1113 = vadd.xlane.f32.xlu1 %v1112_v30 }
 0x4e9   :  { %v1066_v16 = vmul.f32 1.442695, %v1023_v1 }
 0x4ea   :  { %v3640_v10 = vpop.eup %2812  ;;  %v1064_v37 = vmul.f32 1.442695, %v1022_v32 }
 0x4eb   :  { %v982_v9 = vpop.xlane.xlu1 %981  ;;  %v1106_v12 = vsel %vm931_vm5, %v3640_v10, 0.0 }
 0x4ec   :  { %v3645_v40 = vpop.eup %2814  ;;  %2820 = vpow2.f32 %v1064_v37  ;;  %v1020_v4 = vsub.f32 %v3531_v28, %v982_v9  ;;  %1107 = vadd.xlane.f32.xlu1 %v1106_v12 }
 0x4ed   :  { %v1127_v15 = vsel %vm931_vm5, %v3645_v40, 0.0 }
 0x4ee   :  { %v1060_v45 = vmul.f32 1.442695, %v1020_v4  ;;  %1128 = vadd.xlane.f32.xlu0 %v1127_v15 }
 0x4ef   :  { %v1003_v19 = vpop.xlane.xlu1 %1002 }
 0x4f0   :  { %v3650_v23 = vpop.eup %2816  ;;  %2822 = vpow2.f32 %v1060_v45  ;;  %v1027_v21 = vsub.f32 %v3537_v34, %v1003_v19 }
 0x4f1   :  { %v1121_v49 = vsel %vm931_vm5, %v3650_v23, 0.0  ;;  %2824 = vpow2.f32 %v1066_v16 }
 0x4f2   :  { %v3655_v27 = vpop.eup %2818  ;;  %v1074_v28 = vmul.f32 1.442695, %v1027_v21  ;;  %1122 = vadd.xlane.f32.xlu0 %v1121_v49 }
 0x4f3   :  { %v1136_v31 = vsel %vm931_vm5, %v3655_v27, 0.0 }
 0x4f4   :  { %2826 = vpow2.f32 %v1074_v28 }
 0x4f6   :  { %v3659_v55 = vpop.eup %2820  ;;  %1137 = vadd.xlane.f32.xlu0 %v1136_v31 }
 0x4f7   :  { %v1130_v24 = vsel %vm931_vm5, %v3659_v55, 0.0 }
 0x4f8   :  { %1131 = vadd.xlane.f32.xlu1 %v1130_v24 }
 0x4fa   :  { %v3663_v34 = vpop.eup %2822 }
 0x4fb   :  { %v1124_v20 = vsel %vm931_vm5, %v3663_v34, 0.0  ;;  %v3667_v26 = vpop.eup %2824 }
 0x4fc   :  { %1125 = vadd.xlane.f32.xlu0 %v1124_v20  ;;  %v1133_v53 = vsel %vm931_vm5, %v3667_v26, 0.0  ;;  %v1411_v20 = vsel %vm1223_vm3, %v3547_v46, 0 }
 0x4fe   :  { %v3671_v39 = vpop.eup %2826 }
 0x4ff   :  { %v1145_v41 = vsel %vm931_vm5, %v3671_v39, 0.0 }
 0x500   :  { %1134 = vadd.xlane.f32.xlu0 %v1133_v53 }
 0x504   :  { %1146 = vadd.xlane.f32.xlu0 %v1145_v41 }
 0x50a   :  { %v1084_v47 = vpop.xlane.xlu0 %1083 }
 0x50b   :  { %2828 = vrcp.f32 %v1084_v47 }
 0x50d   :  { %v1081_v58 = vpop.xlane.xlu1 %1080 }
 0x50e   :  { %2830 = vrcp.f32 %v1081_v58  ;;  %v1078_v50 = vpop.xlane.xlu0 %1077 }
 0x50f   :  { %2832 = vrcp.f32 %v1078_v50 }
 0x511   :  { %v997_v51 = vpop.xlane.xlu1 %996 }
 0x512   :  { %v1025_v61 = vsub.f32 %v3564_v11, %v997_v51  ;;  %v1000_v52 = vpop.xlane.xlu0 %999 }
 0x513   :  { %v1026_v57 = vsub.f32 %v3570_v5, %v1000_v52 }
 0x514   :  { %v1070_v59 = vmul.f32 1.442695, %v1025_v61 }
 0x515   :  { %v1072_v63 = vmul.f32 1.442695, %v1026_v57  ;;  %v2829_v3 = vpop.eup %2828 }
 0x516   :  { %2834 = vpow2.f32 %v1070_v59  ;;  %v1174_v1 = vmul.f32 %v2829_v3, %v3552_v60  ;;  %v3702_v15 = vpop.permute.xlu0 %1587 }
 0x517   :  { %2836 = vpow2.f32 %v1072_v63 }
 0x518   :  { %v2831_v30 = vpop.eup %2830  ;;  %v1197_v4 = vpack.c.bf16 %v1174_v1, %v1174_v1 }
 0x519   :  { %v2833_v32 = vpop.eup %2832  ;;  %v1173_v37 = vmul.f32 %v2831_v30, %v3556_v0 }
 0x51a   :  { %v1172_v9 = vmul.f32 %v2833_v32, %v3558_v6  ;;  %v1287_v6 = vsel %vm1223_vm3, %v3545_v44, 0 }
 0x51c   :  { %v1196_v12 = vpack.c.bf16 %v1173_v37, %v1172_v9 }
 0x51e   :  { %2523 = vmatprep.mubr.msk.bf16.mxu1 %vm931_vm5, %v1196_v12 }
 0x51f   :  { %2524 = vmatmul.mubr.msk.bf16.vlgmr.msra.gmra.mrb[28].mxu1 %vm931_vm5, %v1197_v4 }
 0x520   :  { %v3682_v11 = vpop.eup %2834  ;;  %2528 = vmatpush3.bf16.msra.mxu1 %v3391_v62  ;;  %v3700_v62 = vpop.permute.xlu1 %1525 }
 0x521   :  { %v3685_v5 = vpop.eup %2836  ;;  %2660 = vmatprep.subr.msk.bf16.mxu1 %vm1223_vm3, %v3545_v44  ;;  %v1139_v60 = vsel %vm931_vm5, %v3682_v11, 0.0 }
 0x522   :  { %1140 = vadd.xlane.f32.xlu1 %v1139_v60  ;;  %v1142_v0 = vsel %vm931_vm5, %v3685_v5, 0.0 }
 0x523   :  { %1143 = vadd.xlane.f32.xlu0 %v1142_v0 }
 0x524   :  { %2530 = vmatpush3.bf16.msra.mxu1 %v1287_v6 }
 0x525   :  { %2543 = vmatprep.subr.bf16.mxu1 %v3505_v7 }
 0x533   :  { %1649 = vrot.lane.b32.xlu1 %v3308_v29, %s3038_s24 }
 0x539   :  { %1647 = vrot.lane.b32.xlu0 %v3296_v17, %s3038_s24 }
 0x546   :  { %v1090_v16 = vpop.xlane.xlu1 %1089 }
 0x547   :  { %v1093_v45 = vpop.xlane.xlu0 %1092 }
 0x548   :  { %2838 = vrcp.f32 %v1093_v45 }
 0x549   :  { %2840 = vrcp.f32 %v1090_v16 }
 0x54b   :  { %v1087_v19 = vpop.xlane.xlu0 %1086 }
 0x54c   :  { %2842 = vrcp.f32 %v1087_v19 }
 0x552   :  { %v2839_v44 = vpop.eup %2838 }
 0x553   :  { %v2841_v21 = vpop.eup %2840  ;;  %v1177_v28 = vmul.f32 %v2839_v44, %v3585_v18 }
 0x554   :  { %v1176_v31 = vmul.f32 %v2841_v21, %v3583_v35 }
 0x555   :  { %v1199_v24 = vpack.c.bf16 %v1177_v28, %v1177_v28 }
 0x556   :  { %v2843_v49 = vpop.eup %2842 }
 0x557   :  { %v1175_v29 = vmul.f32 %v2843_v49, %v3591_v22 }
 0x559   :  { %v1198_v17 = vpack.c.bf16 %v1176_v31, %v1175_v29 }
 0x55b   :  { %2531 = vmatprep.mubr.msk.bf16.mxu1 %vm931_vm5, %v1198_v17 }
 0x55c   :  { %2532 = vmatmul.mubr.msk.bf16.vlgmr.msra.gmra.mrb[32].mxu1 %vm931_vm5, %v1199_v24 }
 0x55d   :  { %2544 = vmatpush3.bf16.msra.mxu1 %v3505_v7 }
 0x55e   :  { %2662 = vmatprep.subr.msk.bf16.mxu1 %vm1223_vm3, %v3547_v46 }
 0x561   :  { %2546 = vmatpush3.bf16.msra.mxu1 %v1411_v20  ;;  %v1102_v18 = vpop.xlane.xlu1 %1101 }
 0x562   :  { %2559 = vmatprep.subr.bf16.mxu1 %v3543_v42  ;;  %2844 = vrcp.f32 %v1102_v18 }
 0x565   :  { %v1096_v35 = vpop.xlane.xlu1 %1095 }
 0x566   :  { %2846 = vrcp.f32 %v1096_v35  ;;  %v1099_v22 = vpop.xlane.xlu0 %1098 }
 0x567   :  { %2848 = vrcp.f32 %v1099_v22 }
 0x56b   :  { %v1111_v53 = vpop.xlane.xlu0 %1110 }
 0x56c   :  { %v2845_v41 = vpop.eup %2844 }
 0x56d   :  { %v1180_v50 = vmul.f32 %v2845_v41, %v3599_v14 }
 0x56f   :  { %v1105_v47 = vpop.xlane.xlu0 %1104  ;;  %v1201_v63 = vpack.c.bf16 %v1180_v50, %v1180_v50 }
 0x570   :  { %v2847_v58 = vpop.eup %2846 }
 0x571   :  { %v2849_v7 = vpop.eup %2848  ;;  %v1120_v51 = vpop.xlane.xlu1 %1119  ;;  %v1178_v61 = vmul.f32 %v2847_v58, %v3604_v8  ;;  %v1473_v8 = vsel %vm1223_vm3, %v3525_v25, 0 }
 0x572   :  { %v1179_v46 = vmul.f32 %v2849_v7, %v3607_v13  ;;  %2850 = vrcp.f32 %v1120_v51 }
 0x574   :  { %v1117_v52 = vpop.xlane.xlu0 %1116  ;;  %v1200_v57 = vpack.c.bf16 %v1179_v46, %v1178_v61 }
 0x575   :  { %2852 = vrcp.f32 %v1117_v52  ;;  %v1114_v59 = vpop.xlane.xlu1 %1113 }
 0x576   :  { %2854 = vrcp.f32 %v1114_v59  ;;  %2539 = vmatprep.mubr.msk.bf16.mxu0 %vm931_vm5, %v1200_v57 }
 0x577   :  { %2856 = vrcp.f32 %v1111_v53  ;;  %2540 = vmatmul.mubr.msk.bf16.vlgmr.msra.gmra.mrb[16].mxu0 %vm931_vm5, %v1201_v63 }
 0x578   :  { %2858 = vrcp.f32 %v1105_v47  ;;  %2552 = vmatpush3.bf16.msra.mxu0 %v3399_v2 }
 0x579   :  { %2663 = vmatprep.subr.msk.bf16.mxu0 %vm1223_vm3, %v3525_v25  ;;  %v1108_v14 = vpop.xlane.xlu1 %1107 }
 0x57a   :  { %2860 = vrcp.f32 %v1108_v14 }
 0x57b   :  { %v1129_v13 = vpop.xlane.xlu0 %1128 }
 0x57c   :  { %2554 = vmatpush3.bf16.msra.mxu0 %v1473_v8  ;;  %v2851_v3 = vpop.eup %2850  ;;  %2862 = vrcp.f32 %v1129_v13 }
 0x57d   :  { %2567 = vmatprep.subr.bf16.mxu0 %v3539_v36  ;;  %v1186_v37 = vmul.f32 %v2851_v3, %v3625_v48 }
 0x57f   :  { %v2853_v30 = vpop.eup %2852  ;;  %v1123_v32 = vpop.xlane.xlu0 %1122  ;;  %v1205_v6 = vpack.c.bf16 %v1186_v37, %v1186_v37 }
 0x580   :  { %v2855_v1 = vpop.eup %2854  ;;  %v1185_v2 = vmul.f32 %v2853_v30, %v3631_v54  ;;  %2864 = vrcp.f32 %v1123_v32 }
 0x581   :  { %v2857_v9 = vpop.eup %2856  ;;  %v1184_v12 = vmul.f32 %v2855_v1, %v3633_v56  ;;  %v2760_v1 = vld [vmem:[%s3977_s5] sm:$0xff]  }
 0x582   :  { %v2859_v4 = vpop.eup %2858  ;;  %v1183_v25 = vmul.f32 %v2857_v9, %v3615_v33 }
 0x583   :  { %v1204_v60 = vpack.c.bf16 %v1185_v2, %v1184_v12  ;;  %v1138_v16 = vpop.xlane.xlu0 %1137  ;;  %v1181_v45 = vmul.f32 %v2859_v4, %v3621_v38  ;;  %v1597_v38 = vsel %vm1223_vm3, %v3702_v15, 0 }
 0x584   :  { %v2861_v0 = vpop.eup %2860  ;;  %v1203_v54 = vpack.c.bf16 %v1183_v25, %v1183_v25 }
 0x585   :  { %2555 = vmatprep.mubr.msk.bf16.mxu0 %vm931_vm5, %v1204_v60  ;;  %v1182_v19 = vmul.f32 %v2861_v0, %v3640_v10  ;;  %v1132_v33 = vpop.xlane.xlu1 %1131  ;;  %v1535_v10 = vsel %vm1223_vm3, %v3700_v62, 0 }
 0x586   :  { %2556 = vmatmul.mubr.msk.bf16.vlgmr.msra.gmra.mrb[20].mxu0 %vm931_vm5, %v1205_v6 }
 0x587   :  { %2568 = vmatpush3.bf16.msra.mxu0 %v3539_v36  ;;  %v1202_v48 = vpack.c.bf16 %v1182_v19, %v1181_v45  ;;  %v2761_v19 = vld [vmem:[%s3977_s5 + $0x8] sm:$0xff]  }
 0x588   :  { %2665 = vmatprep.subr.msk.bf16.mxu0 %vm1223_vm3, %v3702_v15  ;;  %v2863_v15 = vpop.eup %2862 }
 0x589   :  { %2547 = vmatprep.mubr.msk.bf16.mxu1 %vm931_vm5, %v1202_v48  ;;  %v1126_v56 = vpop.xlane.xlu0 %1125  ;;  %v1189_v49 = vmul.f32 %v2863_v15, %v3645_v40 }
 0x58a   :  { %2866 = vrcp.f32 %v1126_v56  ;;  %2548 = vmatmul.mubr.msk.bf16.vlgmr.msra.gmra.mrb[36].mxu1 %vm931_vm5, %v1203_v54  ;;  %v2865_v44 = vpop.eup %2864 }
 0x58b   :  { %2868 = vrcp.f32 %v1138_v16  ;;  %2560 = vmatpush3.bf16.msra.mxu1 %v3543_v42  ;;  %2570 = vmatpush3.bf16.msra.mxu0 %v1597_v38  ;;  %v1187_v42 = vmul.f32 %v2865_v44, %v3650_v23  ;;  %v1207_v18 = vpack.c.bf16 %v1189_v49, %v1189_v49 }
 0x58c   :  { %2870 = vrcp.f32 %v1132_v33  ;;  %2664 = vmatprep.subr.msk.bf16.mxu1 %vm1223_vm3, %v3700_v62  ;;  %2583 = vmatprep.subr.bf16.mxu0 %v3032_v43 }
 0x58d   :  { %v1135_v36 = vpop.xlane.xlu0 %1134 }
 0x58e   :  { %2872 = vrcp.f32 %v1135_v36 }
 0x58f   :  { %2562 = vmatpush3.bf16.msra.mxu1 %v1535_v10 }
 0x591   :  { %v1147_v23 = vpop.xlane.xlu0 %1146 }
 0x592   :  { %2874 = vrcp.f32 %v1147_v23 }
 0x594   :  { %v2867_v21 = vpop.eup %2866 }
 0x595   :  { %v2869_v28 = vpop.eup %2868  ;;  %v1188_v29 = vmul.f32 %v2867_v21, %v3663_v34 }
 0x596   :  { %v2871_v31 = vpop.eup %2870  ;;  %v1192_v20 = vmul.f32 %v2869_v28, %v3655_v27 }
 0x597   :  { %v1206_v17 = vpack.c.bf16 %v1188_v29, %v1187_v42  ;;  %v1190_v62 = vmul.f32 %v2871_v31, %v3659_v55 }
 0x598   :  { %v2873_v24 = vpop.eup %2872  ;;  %v1209_v22 = vpack.c.bf16 %v1192_v20, %v1192_v20 }
 0x599   :  { %2563 = vmatprep.mubr.msk.bf16.mxu1 %vm931_vm5, %v1206_v17  ;;  %v1191_v35 = vmul.f32 %v2873_v24, %v3667_v26 }
 0x59a   :  { %2564 = vmatmul.mubr.msk.bf16.vlgmr.msra.gmra.mrb[40].mxu1 %vm931_vm5, %v1207_v18 }
 0x59b   :  { %v1208_v40 = vpack.c.bf16 %v1191_v35, %v1190_v62 }
 0x59c   :  { %v2875_v53 = vpop.eup %2874 }
 0x59d   :  { %2571 = vmatprep.mubr.msk.bf16.mxu0 %vm931_vm5, %v1208_v40  ;;  %v1195_v7 = vmul.f32 %v2875_v53, %v3671_v39 }
 0x59e   :  { %2572 = vmatmul.mubr.msk.bf16.vlgmr.msra.gmra.mrb[24].mxu0 %vm931_vm5, %v1209_v22 }
 0x59f   :  { %2587 = vmatprep.mubr.msk.bf16.mxu0 %vm3033_vm1, %v3032_v43  ;;  %v1211_v46 = vpack.c.bf16 %v1195_v7, %v1195_v7  ;;  %2584 = vmatpush3.bf16.msra.mxu0 %v2760_v1 }
 0x5a0   :  { %2585 = vmatprep.subr.bf16.mxu0 %v3032_v43 }
 0x5a3   :  { %2586 = vmatpush3.bf16.msra.mxu0 %v2761_v19 }
 0x5a4   :  { %2615 = vmatprep.subr.bf16.mxu0 %v3032_v43 }
 0x5af   :  { %v1141_v27 = vpop.xlane.xlu1 %1140 }
 0x5b0   :  { %2876 = vrcp.f32 %v1141_v27  ;;  %v1144_v34 = vpop.xlane.xlu0 %1143 }
 0x5b1   :  { %2878 = vrcp.f32 %v1144_v34 }
 0x5b3   :  { %v1650_v26 = vpop.permute.xlu1 %1649 }
 0x5b4   :  { %v1648_v55 = vpop.permute.xlu0 %1647  ;;  %v1659_v41 = vsel %vm1223_vm3, %v1650_v26, 0 }
 0x5b5   :  { %2575 = vmatprep.subr.bf16.mxu1 %v1648_v55 }
 0x5b6   :  { %2576 = vmatpush3.bf16.msra.mxu1 %v1648_v55 }
 0x5b7   :  { %2666 = vmatprep.subr.msk.bf16.mxu1 %vm1223_vm3, %v1650_v26 }
 0x5ba   :  { %v2877_v47 = vpop.eup %2876  ;;  %2578 = vmatpush3.bf16.msra.mxu1 %v1659_v41 }
 0x5bb   :  { %v2879_v58 = vpop.eup %2878  ;;  %v1193_v50 = vmul.f32 %v2877_v47, %v3682_v11  ;;  %2599 = vmatprep.subr.bf16.mxu1 %v3032_v43 }
 0x5bc   :  { %v1194_v51 = vmul.f32 %v2879_v58, %v3685_v5 }
 0x5be   :  { %v1210_v61 = vpack.c.bf16 %v1194_v51, %v1193_v50 }
 0x5c0   :  { %2579 = vmatprep.mubr.msk.bf16.mxu1 %vm931_vm5, %v1210_v61 }
 0x5c1   :  { %2580 = vmatmul.mubr.msk.bf16.vlgmr.msra.gmra.mrb[44].mxu1 %vm931_vm5, %v1211_v46 }
 0x5c2   :  { %2603 = vmatprep.mubr.msk.bf16.mxu1 %vm3033_vm1, %v3032_v43 }
 0x5f2   :  { %v3769_v52 = vpop.f32.mrb[28].mxu1 }
 0x5f3   :  { %v3771_v57 = vpop.f32.mrb[29].mxu1 }
 0x5f4   :  { %v2526_v39 = vpop.f32.mrb[30].mxu1 }
 0x5f5   :  { %v3773_v59 = vpop.f32.mrb[31].mxu1 }
 0x62f   :  { %v3775_v11 = vpop.f32.mrb[32].mxu1 }
 0x630   :  { %v3777_v63 = vpop.f32.mrb[33].mxu1 }
 0x631   :  { %v2534_v5 = vpop.f32.mrb[34].mxu1 }
 0x632   :  { %v3779_v14 = vpop.f32.mrb[35].mxu1 }
 0x64a   :  { %v2541_v8 = vpop.f32.mrb[16].mxu0 }
 0x64b   :  { %v1385_v13 = vpop.f32.mrb[17].mxu0 }
 0x64c   :  { %v2542_v3 = vpop.f32.mrb[18].mxu0 }
 0x64d   :  { %v1388_v30 = vpop.f32.mrb[19].mxu0 }
 0x64e   :  { %v2713_v32 = vpack.i.bf16 %v1388_v30, %v1385_v13 }
 0x650   :  { %2714 = vrot.lane.b32.xlu0 %v2713_v32, %s3039_s25 }
 0x659   :  { %v2557_v37 = vpop.f32.mrb[20].mxu0 }
 0x65a   :  { %v1509_v2 = vpop.f32.mrb[21].mxu0 }
 0x65b   :  { %v2558_v9 = vpop.f32.mrb[22].mxu0 }
 0x65c   :  { %v1512_v12 = vpop.f32.mrb[23].mxu0 }
 0x65d   :  { %v2718_v4 = vpack.i.bf16 %v1512_v12, %v1509_v2  ;;  %v2549_v60 = vpop.f32.mrb[36].mxu1 }
 0x65e   :  { %v1447_v0 = vpop.f32.mrb[37].mxu1 }
 0x65f   :  { %v2728_v25 = vpack.i.bf16 %v1447_v0, %v2541_v8  ;;  %v2550_v6 = vpop.f32.mrb[38].mxu1  ;;  %2719 = vrot.lane.b32.xlu1 %v2718_v4, %s3040_s4 }
 0x660   :  { %v1450_v16 = vpop.f32.mrb[39].mxu1 }
 0x661   :  { %v2743_v45 = vpack.i.bf16 %v2549_v60, %v1450_v16 }
 0x663   :  { %2729 = vrot.lane.b32.xlu1 %v2728_v25, %s3039_s25 }
 0x66d   :  { %v2565_v48 = vpop.f32.mrb[40].mxu1 }
 0x66e   :  { %v1571_v54 = vpop.f32.mrb[41].mxu1 }
 0x66f   :  { %v2733_v33 = vpack.i.bf16 %v1571_v54, %v2557_v37  ;;  %v2566_v56 = vpop.f32.mrb[42].mxu1 }
 0x670   :  { %v1574_v38 = vpop.f32.mrb[43].mxu1 }
 0x671   :  { %v2748_v36 = vpack.i.bf16 %v2565_v48, %v1574_v38  ;;  %v2573_v10 = vpop.f32.mrb[24].mxu0 }
 0x672   :  { %v1633_v15 = vpop.f32.mrb[25].mxu0 }
 0x673   :  { %v2574_v44 = vpop.f32.mrb[26].mxu0 }
 0x674   :  { %v1636_v21 = vpop.f32.mrb[27].mxu0 }
 0x675   :  { %v2723_v49 = vpack.i.bf16 %v1636_v21, %v1633_v15  ;;  %v2904_v15 = vld [vmem:[%s3972_s0] sm:$0xff] }
 0x677   :  { %2724 = vrot.lane.b32.xlu0 %v2723_v49, %s3041_s20 }
 0x67b   :  { %2734 = vrot.lane.b32.xlu0 %v2733_v33, %s3040_s4 }
 0x67f   :  { %2744 = vrot.lane.b32.xlu0 %v2743_v45, %s3039_s25 }
 0x694   :  { %v2581_v28 = vpop.f32.mrb[44].mxu1 }
 0x695   :  { %v1695_v42 = vpop.f32.mrb[45].mxu1 }
 0x696   :  { %v2738_v29 = vpack.i.bf16 %v1695_v42, %v2573_v10  ;;  %v2582_v31 = vpop.f32.mrb[46].mxu1 }
 0x697   :  { %v1698_v17 = vpop.f32.mrb[47].mxu1 }
 0x698   :  { %v2753_v24 = vpack.i.bf16 %v2581_v28, %v1698_v17  ;;  %2739 = vrot.lane.b32.xlu1 %v2738_v29, %s3041_s20  ;;  %v2905_v28 = vld [vmem:[%s3972_s0 + $0x8] sm:$0xff] }
 0x69a   :  { %2754 = vrot.lane.b32.xlu0 %v2753_v24, %s3041_s20 }
 0x69c   :  { %2749 = vrot.lane.b32.xlu1 %v2748_v36, %s3040_s4 }
 0x6c2   :  { %v2715_v20 = vpop.permute.xlu0 %2714 }
 0x6c3   :  { %v2717_v62 = vunpack.i.h.bf16 %v2715_v20  ;;  %v2716_v35 = vunpack.i.l.bf16 %v2715_v20 }
 0x6c5   :  { %v1782_v27 = vsel %vm379_vm2, %v3773_v59, %v2717_v62  ;;  %v1781_v34 = vsel %vm379_vm2, %v3771_v57, %v2716_v35  ;;  %v2906_v62 = vld [vmem:[%s3972_s0 + $0x10] sm:$0xff] }
 0x6d1   :  { %v2720_v18 = vpop.permute.xlu1 %2719 }
 0x6d2   :  { %v2722_v40 = vunpack.i.h.bf16 %v2720_v18  ;;  %v2721_v22 = vunpack.i.l.bf16 %v2720_v18 }
 0x6d4   :  { %v1788_v53 = vsel %vm1787_vm6, %v1781_v34, %v2721_v22  ;;  %v1789_v41 = vsel %vm1787_vm6, %v1782_v27, %v2722_v40 }
 0x6d5   :  { %v2730_v51 = vpop.permute.xlu1 %2729 }
 0x6d6   :  { %v2732_v61 = vunpack.i.h.bf16 %v2730_v51  ;;  %v2731_v46 = vunpack.i.l.bf16 %v2730_v51 }
 0x6d8   :  { %v1784_v8 = vsel %vm379_vm2, %v3777_v63, %v2732_v61  ;;  %v1783_v13 = vsel %vm379_vm2, %v3769_v52, %v2731_v46  ;;  %v2909_v61 = vld [vmem:[%s3972_s0 + $0x28] sm:$0xff] }
 0x6e9   :  { %v2725_v23 = vpop.permute.xlu0 %2724 }
 0x6ea   :  { %v2727_v55 = vunpack.i.h.bf16 %v2725_v23  ;;  %v2726_v26 = vunpack.i.l.bf16 %v2725_v23  ;;  %v2907_v23 = vld [vmem:[%s3972_s0 + $0x18] sm:$0xff] }
 0x6ec   :  { %v1794_v47 = vsel %vm931_vm5, %v1788_v53, %v2726_v26  ;;  %v1795_v58 = vsel %vm931_vm5, %v1789_v41, %v2727_v55 }
 0x6ed   :  { %v1800_v7 = vpack.c.bf16 %v1795_v58, %v1794_v47  ;;  %v2735_v50 = vpop.permute.xlu0 %2734  ;;  %v2908_v58 = vld [vmem:[%s3972_s0 + $0x20] sm:$0xff] }
 0x6ee   :  { %v2737_v57 = vunpack.i.h.bf16 %v2735_v50  ;;  %v2736_v39 = vunpack.i.l.bf16 %v2735_v50 }
 0x6ef   :  { %2588 = vmatmul.mubr.msk.bf16.vlgmr.msra.gmra.mrb[28].mxu0 %vm101_vm0, %v1800_v7 }
 0x6f0   :  { %2591 = vmatprep.mubr.msk.bf16.mxu0 %vm3033_vm1, %v3032_v43  ;;  %v1791_v32 = vsel %vm1787_vm6, %v1784_v8, %v2737_v57  ;;  %v1790_v1 = vsel %vm1787_vm6, %v1783_v13, %v2736_v39 }
 0x6f1   :  { %v2745_v59 = vpop.permute.xlu0 %2744 }
 0x6f2   :  { %v2747_v37 = vunpack.i.h.bf16 %v2745_v59  ;;  %v2746_v2 = vunpack.i.l.bf16 %v2745_v59 }
 0x6f4   :  { %v1786_v52 = vsel %vm379_vm2, %v3775_v11, %v2747_v37  ;;  %v1785_v6 = vsel %vm379_vm2, %v3779_v14, %v2746_v2  ;;  %v2326_v11 = vld [vmem:[#allocation5] ss:$0 sm:$0xff] }
 0x70a   :  { %v2740_v5 = vpop.permute.xlu1 %2739 }
 0x70b   :  { %v2742_v3 = vunpack.i.h.bf16 %v2740_v5  ;;  %v2741_v30 = vunpack.i.l.bf16 %v2740_v5 }
 0x70c   :  { %v2755_v4 = vpop.permute.xlu0 %2754 }
 0x70d   :  { %v1796_v9 = vsel %vm931_vm5, %v1790_v1, %v2741_v30  ;;  %v1797_v12 = vsel %vm931_vm5, %v1791_v32, %v2742_v3  ;;  %v2757_v16 = vunpack.i.h.bf16 %v2755_v4  ;;  %v2756_v45 = vunpack.i.l.bf16 %v2755_v4 }
 0x70e   :  { %v1801_v60 = vpack.c.bf16 %v1797_v12, %v1796_v9  ;;  %v2750_v0 = vpop.permute.xlu1 %2749 }
 0x70f   :  { %v2752_v25 = vunpack.i.h.bf16 %v2750_v0  ;;  %v2751_v63 = vunpack.i.l.bf16 %v2750_v0 }
 0x710   :  { %2592 = vmatmul.mubr.msk.bf16.gmra.mrb[32].mxu0 %vm101_vm0, %v1801_v60 }
 0x711   :  { %v1792_v19 = vsel %vm1787_vm6, %v1785_v6, %v2751_v63  ;;  %v1793_v48 = vsel %vm1787_vm6, %v1786_v52, %v2752_v25  ;;  %2595 = vmatprep.mubr.msk.bf16.mxu0 %vm3033_vm1, %v3032_v43  ;;  %v2762_v63 = vld [vmem:[%s3981_s9] sm:$0xff]  }
 0x712   :  { %v1798_v54 = vsel %vm931_vm5, %v1792_v19, %v2756_v45  ;;  %v1799_v33 = vsel %vm931_vm5, %v1793_v48, %v2757_v16  ;;  %2600 = vmatpush3.bf16.msra.mxu1 %v2762_v63  ;;  %v2763_v45 = vld [vmem:[%s3981_s9 + $0x8] sm:$0xff]  }
 0x713   :  { %v1802_v56 = vpack.c.bf16 %v1799_v33, %v1798_v54  ;;  %2601 = vmatprep.subr.bf16.mxu1 %v3032_v43 }
 0x716   :  { %2602 = vmatpush3.bf16.msra.mxu1 %v2763_v45 }
 0x718   :  { %2596 = vmatmul.mubr.msk.bf16.gmra.mrb[36].mxu0 %vm101_vm0, %v1802_v56 }
 0x719   :  { %2631 = vmatprep.mubr.msk.bf16.mxu0 %vm3033_vm1, %v3032_v43 }
 0x7c2   :  { %v1869_v14 = vpop.f32.mrb[28].mxu0 }
 0x7c3   :  { %v1870_v38 = vadd.f32 %v2326_v11, %v1869_v14  ;;  %v2589_v36 = vpop.f32.mrb[29].mxu0 }
 0x7c4   :  { %v1872_v10 = vpop.f32.mrb[30].mxu0 }
 0x7c5   :  { %v3831_v44 = vadd.f32 %v2904_v15, %v1870_v38  ;;  %v1873_v21 = vadd.f32 %v2326_v11, %v1872_v10  ;;  %v2590_v49 = vpop.f32.mrb[31].mxu0 }
 0x7c6   :  { %v2765_v49 = vld [vmem:[%s3983_s11 + $0x8] sm:$0xff]  }
 0x7c7   :  { %v3836_v42 = vadd.f32 %v2905_v28, %v1873_v21  ;;  %v1900_v29 = vsel %vm101_vm0, %v3831_v44, 0.0  ;;  %v2764_v21 = vld [vmem:[%s3983_s11] sm:$0xff]  }
 0x7c8   :  { %1901 = vadd.xlane.f32.xlu1 %v1900_v29  ;;  %2616 = vmatpush3.bf16.msra.mxu0 %v2764_v21 }
 0x7c9   :  { %v1903_v31 = vsel %vm101_vm0, %v3836_v42, 0.0  ;;  %2617 = vmatprep.subr.bf16.mxu0 %v3032_v43 }
 0x7ca   :  { %1904 = vadd.xlane.f32.xlu0 %v1903_v31 }
 0x7cc   :  { %2618 = vmatpush3.bf16.msra.mxu0 %v2765_v49 }
 0x7cd   :  { %2619 = vmatprep.subr.bf16.mxu0 %v3032_v43 }
 0x7e3   :  { %v1877_v17 = vpop.f32.mrb[32].mxu0 }
 0x7e4   :  { %v1878_v24 = vadd.f32 %v2326_v11, %v1877_v17  ;;  %v2593_v20 = vpop.f32.mrb[33].mxu0 }
 0x7e5   :  { %v1880_v18 = vpop.f32.mrb[34].mxu0 }
 0x7e6   :  { %v3845_v35 = vadd.f32 %v2906_v62, %v1878_v24  ;;  %v1881_v40 = vadd.f32 %v2326_v11, %v1880_v18  ;;  %v2594_v22 = vpop.f32.mrb[35].mxu0  ;;  %v2332_v62 = vld [vmem:[#allocation7] ss:$0 sm:$0xff] }
 0x7e8   :  { %v3850_v27 = vadd.f32 %v2907_v23, %v1881_v40  ;;  %v1906_v34 = vsel %vm101_vm0, %v3845_v35, 0.0 }
 0x7e9   :  { %1907 = vadd.xlane.f32.xlu0 %v1906_v34 }
 0x7ea   :  { %v1909_v41 = vsel %vm101_vm0, %v3850_v27, 0.0 }
 0x7eb   :  { %v1885_v55 = vpop.f32.mrb[36].mxu0 }
 0x7ec   :  { %v1886_v26 = vadd.f32 %v2326_v11, %v1885_v55  ;;  %v2597_v53 = vpop.f32.mrb[37].mxu0  ;;  %v2333_v55 = vld [vmem:[#allocation8] ss:$0 sm:$0xff] }
 0x7ed   :  { %1910 = vadd.xlane.f32.xlu0 %v1909_v41  ;;  %v1888_v47 = vpop.f32.mrb[38].mxu0 }
 0x7ee   :  { %v3859_v7 = vadd.f32 %v2908_v58, %v1886_v26  ;;  %v1889_v50 = vadd.f32 %v2326_v11, %v1888_v47  ;;  %v2598_v51 = vpop.f32.mrb[39].mxu0 }
 0x7f0   :  { %v3864_v46 = vadd.f32 %v2909_v61, %v1889_v50  ;;  %v1912_v57 = vsel %vm101_vm0, %v3859_v7, 0.0 }
 0x7f1   :  { %1913 = vadd.xlane.f32.xlu1 %v1912_v57 }
 0x7f2   :  { %v1915_v39 = vsel %vm101_vm0, %v3864_v46, 0.0 }
 0x7f3   :  { %1916 = vadd.xlane.f32.xlu0 %v1915_v39 }
 0x855   :  { %v1902_v59 = vpop.xlane.xlu1 %1901 }
 0x856   :  { %v1918_v5 = vmul.f32 0.03125, %v1902_v59 }
 0x857   :  { %v1905_v8 = vpop.xlane.xlu0 %1904 }
 0x858   :  { %v1924_v13 = vsub.f32 %v3831_v44, %v1918_v5  ;;  %v1919_v3 = vmul.f32 0.03125, %v1905_v8 }
 0x85a   :  { %v1925_v30 = vsub.f32 %v3836_v42, %v1919_v3  ;;  %v1930_v32 = vmul.f32 %v1924_v13, %v1924_v13 }
 0x85c   :  { %v1936_v1 = vsel %vm101_vm0, %v1930_v32, 0.0  ;;  %v1931_v37 = vmul.f32 %v1925_v30, %v1925_v30 }
 0x85d   :  { %1937 = vadd.xlane.f32.xlu1 %v1936_v1 }
 0x85e   :  { %v1939_v2 = vsel %vm101_vm0, %v1931_v37, 0.0 }
 0x85f   :  { %1940 = vadd.xlane.f32.xlu0 %v1939_v2 }
 0x876   :  { %v1908_v9 = vpop.xlane.xlu0 %1907 }
 0x877   :  { %v1920_v12 = vmul.f32 0.03125, %v1908_v9 }
 0x879   :  { %v3875_v4 = vsub.f32 %v3845_v35, %v1920_v12 }
 0x87a   :  { %v1911_v60 = vpop.xlane.xlu0 %1910 }
 0x87b   :  { %v1921_v0 = vmul.f32 0.03125, %v1911_v60  ;;  %v1932_v25 = vmul.f32 %v3875_v4, %v3875_v4 }
 0x87d   :  { %v3883_v52 = vsub.f32 %v3850_v27, %v1921_v0  ;;  %v1942_v6 = vsel %vm101_vm0, %v1932_v25, 0.0 }
 0x87e   :  { %1943 = vadd.xlane.f32.xlu1 %v1942_v6  ;;  %v1914_v16 = vpop.xlane.xlu1 %1913 }
 0x87f   :  { %v1922_v19 = vmul.f32 0.03125, %v1914_v16  ;;  %v1933_v48 = vmul.f32 %v3883_v52, %v3883_v52 }
 0x880   :  { %v1917_v54 = vpop.xlane.xlu0 %1916 }
 0x881   :  { %v1928_v33 = vsub.f32 %v3859_v7, %v1922_v19  ;;  %v1923_v56 = vmul.f32 0.03125, %v1917_v54  ;;  %v1945_v11 = vsel %vm101_vm0, %v1933_v48, 0.0 }
 0x882   :  { %1946 = vadd.xlane.f32.xlu0 %v1945_v11  ;;  %v2768_v11 = vld [vmem:[%s3983_s11 + $0x20] sm:$0xff]  }
 0x883   :  { %v1929_v14 = vsub.f32 %v3864_v46, %v1923_v56  ;;  %v1934_v38 = vmul.f32 %v1928_v33, %v1928_v33 }
 0x885   :  { %v1948_v36 = vsel %vm101_vm0, %v1934_v38, 0.0  ;;  %v1935_v10 = vmul.f32 %v1929_v14, %v1929_v14  ;;  %v2770_v38 = vld [vmem:[%s3983_s11 + $0x30] sm:$0xff]  }
 0x886   :  { %1949 = vadd.xlane.f32.xlu1 %v1948_v36  ;;  %v2771_v36 = vld [vmem:[%s3983_s11 + $0x38] sm:$0xff]  }
 0x887   :  { %v1951_v15 = vsel %vm101_vm0, %v1935_v10, 0.0  ;;  %v2334_v10 = vld [vmem:[%s3982_s10] ss:$0 sm:$0xff] }
 0x888   :  { %1952 = vadd.xlane.f32.xlu0 %v1951_v15 }
 0x8ea   :  { %v1938_v28 = vpop.xlane.xlu1 %1937 }
 0x8eb   :  { %v1954_v29 = vmul.f32 0.03125, %v1938_v28 }
 0x8ec   :  { %v1941_v31 = vpop.xlane.xlu0 %1940 }
 0x8ed   :  { %v1960_v17 = vadd.f32 1e-05, %v1954_v29  ;;  %v1955_v24 = vmul.f32 0.03125, %v1941_v31 }
 0x8ef   :  { %2880 = vrsqrt.f32 %v1960_v17  ;;  %v1961_v20 = vadd.f32 1e-05, %v1955_v24 }
 0x8f1   :  { %2882 = vrsqrt.f32 %v1961_v20 }
 0x8f9   :  { %v2881_v18 = vpop.eup %2880 }
 0x8fa   :  { %v1972_v40 = vmul.f32 %v2881_v18, %v1924_v13 }
 0x8fb   :  { %v2883_v22 = vpop.eup %2882 }
 0x8fc   :  { %v1984_v23 = vmul.f32 %v2332_v62, %v1972_v40  ;;  %v1973_v34 = vmul.f32 %v2883_v22, %v1925_v30 }
 0x8fe   :  { %v1985_v26 = vmul.f32 %v2332_v62, %v1973_v34  ;;  %v1996_v53 = vadd.f32 %v2333_v55, %v1984_v23 }
 0x900   :  { %v1997_v41 = vadd.f32 %v2333_v55, %v1985_v26 }
 0x902   :  { %v2002_v47 = vpack.c.bf16 %v1997_v41, %v1996_v53 }
 0x904   :  { %2604 = vmatmul.mubr.msk.bf16.vlgmr.msra.gmra.mrb[48].mxu1 %vm101_vm0, %v2002_v47 }
 0x905   :  { %2607 = vmatprep.mubr.msk.bf16.mxu1 %vm3033_vm1, %v3032_v43 }
 0x90b   :  { %v1944_v58 = vpop.xlane.xlu1 %1943 }
 0x90c   :  { %v1956_v50 = vmul.f32 0.03125, %v1944_v58 }
 0x90e   :  { %v1962_v51 = vadd.f32 1e-05, %v1956_v50 }
 0x90f   :  { %v1947_v61 = vpop.xlane.xlu0 %1946 }
 0x910   :  { %2884 = vrsqrt.f32 %v1962_v51  ;;  %v1957_v57 = vmul.f32 0.03125, %v1947_v61 }
 0x912   :  { %v1963_v39 = vadd.f32 1e-05, %v1957_v57 }
 0x913   :  { %v1950_v59 = vpop.xlane.xlu1 %1949 }
 0x914   :  { %2886 = vrsqrt.f32 %v1963_v39  ;;  %v1958_v5 = vmul.f32 0.03125, %v1950_v59 }
 0x915   :  { %v1953_v8 = vpop.xlane.xlu0 %1952 }
 0x916   :  { %v1964_v13 = vadd.f32 1e-05, %v1958_v5  ;;  %v1959_v3 = vmul.f32 0.03125, %v1953_v8 }
 0x918   :  { %2888 = vrsqrt.f32 %v1964_v13  ;;  %v1965_v30 = vadd.f32 1e-05, %v1959_v3 }
 0x91a   :  { %v2885_v32 = vpop.eup %2884  ;;  %2890 = vrsqrt.f32 %v1965_v30 }
 0x91b   :  { %v1974_v1 = vmul.f32 %v2885_v32, %v3875_v4 }
 0x91d   :  { %v1986_v9 = vmul.f32 %v2332_v62, %v1974_v1 }
 0x91e   :  { %v2887_v37 = vpop.eup %2886 }
 0x91f   :  { %v1975_v2 = vmul.f32 %v2887_v37, %v3883_v52  ;;  %v1998_v25 = vadd.f32 %v2333_v55, %v1986_v9  ;;  %v2766_v52 = vld [vmem:[%s3983_s11 + $0x10] sm:$0xff]  }
 0x920   :  { %2620 = vmatpush3.bf16.msra.mxu0 %v2766_v52 }
 0x921   :  { %v1987_v12 = vmul.f32 %v2332_v62, %v1975_v2  ;;  %2621 = vmatprep.subr.bf16.mxu0 %v3032_v43 }
 0x922   :  { %v2889_v60 = vpop.eup %2888 }
 0x923   :  { %v1976_v0 = vmul.f32 %v2889_v60, %v1928_v33  ;;  %v1999_v63 = vadd.f32 %v2333_v55, %v1987_v12  ;;  %v2767_v33 = vld [vmem:[%s3983_s11 + $0x18] sm:$0xff]  }
 0x924   :  { %v2891_v6 = vpop.eup %2890  ;;  %2622 = vmatpush3.bf16.msra.mxu0 %v2767_v33  ;;  %v2340_v33 = vld [vmem:[%s3984_s12] ss:$0 sm:$0xff]  ;;  %s3042_s12 = smov [#allocation10]  }
 0x925   :  { %v1977_v16 = vmul.f32 %v2891_v6, %v1929_v14  ;;  %v2003_v45 = vpack.c.bf16 %v1999_v63, %v1998_v25  ;;  %v1988_v19 = vmul.f32 %v2332_v62, %v1976_v0  ;;  %2623 = vmatprep.subr.bf16.mxu0 %v3032_v43  ;;  %v2769_v14 = vld [vmem:[%s3983_s11 + $0x28] sm:$0xff]   ;;  %s2272_s19 = sshll.u32 %s3042_s12, 4  ;;  %s2273_s19 = int_to_ptr.vmem [resolvable:$true] %s2272_s19 }
 0x926   :  { %s2998_s3 = scalar_lea.vmem %s2273_s19, 768  ;;  %p3003_p5 = scmp.lt.s32.totalorder %s2273_s19, %s2273_s19 }
 0x927   :  { %2608 = vmatmul.mubr.msk.bf16.gmra.mrb[52].mxu1 %vm101_vm0, %v2003_v45  ;;  %v1989_v48 = vmul.f32 %v2332_v62, %v1977_v16  ;;  %v2000_v54 = vadd.f32 %v2333_v55, %v1988_v19  ;;  %p2999_p4 = scmp.ne.s32.totalorder %s2273_s19, %s2998_s3  ;;  %p3004_p6 = scmp.lt.s32.totalorder %s2998_s3, %s2998_s3 }
 0x928   :  { %2611 = vmatprep.mubr.msk.bf16.mxu1 %vm3033_vm1, %v3032_v43  ;;  %2624 = vmatpush3.bf16.msra.mxu0 %v2768_v11 }
 0x929   :  { %v2001_v4 = vadd.f32 %v2333_v55, %v1989_v48  ;;  %2625 = vmatprep.subr.bf16.mxu0 %v3032_v43  ;;  %p3005_p7 = por %p3004_p6, %p3003_p5 }
 0x92b   :  { %v2004_v56 = vpack.c.bf16 %v2001_v4, %v2000_v54  ;;  %p3006_p8 = pnand %p3005_p7, %p2999_p4 }
 0x92c   :  { %2626 = vmatpush3.bf16.msra.mxu0 %v2769_v14 }
 0x92d   :  { %2627 = vmatprep.subr.bf16.mxu0 %v3032_v43 }
 0x92f   :  { %2612 = vmatmul.mubr.msk.bf16.gmra.mrb[56].mxu1 %vm101_vm0, %v2004_v56 }
 0x930   :  { %2628 = vmatpush3.bf16.msra.mxu0 %v2770_v38 }
 0x931   :  { %2629 = vmatprep.subr.bf16.mxu0 %v3032_v43 }
 0x934   :  { %2630 = vmatpush3.bf16.msra.mxu0 %v2771_v36 }
 0x9d7   :  { %v2071_v15 = vpop.f32.mrb[48].mxu1 }
 0x9d8   :  { %v2072_v21 = vadd.f32 %v2334_v10, %v2071_v15  ;;  %v2605_v49 = vpop.f32.mrb[49].mxu1 }
 0x9d9   :  { %v2074_v28 = vpop.f32.mrb[50].mxu1 }
 0x9da   :  { %v2100_v29 = vmul.f32 0.70710677, %v2072_v21  ;;  %v2075_v31 = vadd.f32 %v2334_v10, %v2074_v28  ;;  %v2606_v17 = vpop.f32.mrb[51].mxu1  ;;  %v2094_v40 = vmul.f32 0.5, %v2072_v21 }
 0x9dc   :  { %2892 = verf.f32 %v2100_v29  ;;  %v2101_v24 = vmul.f32 0.70710677, %v2075_v31  ;;  %v2095_v22 = vmul.f32 0.5, %v2075_v31 }
 0x9de   :  { %2894 = verf.f32 %v2101_v24 }
 0x9e6   :  { %v2893_v20 = vpop.eup %2892 }
 0x9e7   :  { %v2112_v18 = vadd.f32 1.0, %v2893_v20 }
 0x9e8   :  { %v2895_v62 = vpop.eup %2894 }
 0x9e9   :  { %v2113_v23 = vadd.f32 1.0, %v2895_v62  ;;  %v2118_v34 = vmul.f32 %v2112_v18, %v2094_v40 }
 0x9eb   :  { %v2119_v55 = vmul.f32 %v2113_v23, %v2095_v22 }
 0x9ed   :  { %v2124_v26 = vpack.c.bf16 %v2119_v55, %v2118_v34 }
 0x9ef   :  { %2632 = vmatmul.mubr.bf16.vlgmr.msra.gmra.mrb[40].mxu0 %v2124_v26 }
 0x9f0   :  { %2635 = vmatprep.mubr.msk.bf16.mxu0 %vm3033_vm1, %v3032_v43 }
 0x9fa   :  { %v2079_v53 = vpop.f32.mrb[52].mxu1 }
 0x9fb   :  { %v2080_v41 = vadd.f32 %v2334_v10, %v2079_v53  ;;  %v2609_v47 = vpop.f32.mrb[53].mxu1 }
 0x9fc   :  { %v2082_v58 = vpop.f32.mrb[54].mxu1 }
 0x9fd   :  { %v2102_v50 = vmul.f32 0.70710677, %v2080_v41  ;;  %v2083_v51 = vadd.f32 %v2334_v10, %v2082_v58  ;;  %v2610_v61 = vpop.f32.mrb[55].mxu1  ;;  %v2096_v9 = vmul.f32 0.5, %v2080_v41 }
 0x9ff   :  { %2896 = verf.f32 %v2102_v50  ;;  %v2103_v57 = vmul.f32 0.70710677, %v2083_v51  ;;  %v2097_v12 = vmul.f32 0.5, %v2083_v51 }
 0xa01   :  { %2898 = verf.f32 %v2103_v57 }
 0xa02   :  { %v2087_v39 = vpop.f32.mrb[56].mxu1 }
 0xa03   :  { %v2088_v59 = vadd.f32 %v2334_v10, %v2087_v39  ;;  %v2613_v5 = vpop.f32.mrb[57].mxu1 }
 0xa04   :  { %v2090_v8 = vpop.f32.mrb[58].mxu1 }
 0xa05   :  { %v2104_v13 = vmul.f32 0.70710677, %v2088_v59  ;;  %v2091_v3 = vadd.f32 %v2334_v10, %v2090_v8  ;;  %v2614_v30 = vpop.f32.mrb[59].mxu1  ;;  %v2098_v19 = vmul.f32 0.5, %v2088_v59 }
 0xa07   :  { %2900 = verf.f32 %v2104_v13  ;;  %v2105_v32 = vmul.f32 0.70710677, %v2091_v3  ;;  %v2099_v48 = vmul.f32 0.5, %v2091_v3 }
 0xa09   :  { %v2897_v1 = vpop.eup %2896  ;;  %2902 = verf.f32 %v2105_v32 }
 0xa0a   :  { %v2114_v37 = vadd.f32 1.0, %v2897_v1 }
 0xa0b   :  { %v2899_v2 = vpop.eup %2898 }
 0xa0c   :  { %v2115_v60 = vadd.f32 1.0, %v2899_v2  ;;  %v2120_v0 = vmul.f32 %v2114_v37, %v2096_v9 }
 0xa0e   :  { %v2121_v25 = vmul.f32 %v2115_v60, %v2097_v12 }
 0xa10   :  { %v2125_v63 = vpack.c.bf16 %v2121_v25, %v2120_v0 }
 0xa11   :  { %v2901_v6 = vpop.eup %2900 }
 0xa12   :  { %v2116_v16 = vadd.f32 1.0, %v2901_v6  ;;  %2636 = vmatmul.mubr.bf16.gmra.mrb[44].mxu0 %v2125_v63 }
 0xa13   :  { %v2903_v45 = vpop.eup %2902  ;;  %2639 = vmatprep.mubr.msk.bf16.mxu0 %vm3033_vm1, %v3032_v43 }
 0xa14   :  { %v2117_v4 = vadd.f32 1.0, %v2903_v45  ;;  %v2122_v54 = vmul.f32 %v2116_v16, %v2098_v19 }
 0xa16   :  { %v2123_v56 = vmul.f32 %v2117_v4, %v2099_v48 }
 0xa18   :  { %v2126_v52 = vpack.c.bf16 %v2123_v56, %v2122_v54 }
 0xa1a   :  { %2640 = vmatmul.mubr.bf16.gmra.mrb[48].mxu0 %v2126_v52 }
 0xac2   :  { %v2232_v11 = vpop.f32.mrb[40].mxu0 }
 0xac3   :  { %v2233_v14 = vadd.f32 %v2340_v33, %v2232_v11  ;;  %v2633_v38 = vpop.f32.mrb[41].mxu0 }
 0xac4   :  { %v2235_v36 = vpop.f32.mrb[42].mxu0 }
 0xac5   :  { %v2255_v10 = vadd.f32 %v2233_v14, %v3831_v44  ;;  %v2236_v15 = vadd.f32 %v2340_v33, %v2235_v36  ;;  %v2634_v21 = vpop.f32.mrb[43].mxu0 }
 0xac7   :  { %2261 = vst.msk [vmem:[#allocation10] sm:$0xff] %vm101_vm0, %v2255_v10  ;;  %v2256_v43 = vadd.f32 %v2236_v15, %v3836_v42 }
 0xac9   :  { %2262 = vst.msk [vmem:[#allocation10 + $0x8] sm:$0xff] %vm101_vm0, %v2256_v43 }
 0xae5   :  { %v2240_v49 = vpop.f32.mrb[44].mxu0 }
 0xae6   :  { %v2241_v28 = vadd.f32 %v2340_v33, %v2240_v49  ;;  %v2637_v29 = vpop.f32.mrb[45].mxu0 }
 0xae7   :  { %v2243_v31 = vpop.f32.mrb[46].mxu0 }
 0xae8   :  { %v2257_v17 = vadd.f32 %v2241_v28, %v3845_v35  ;;  %v2244_v24 = vadd.f32 %v2340_v33, %v2243_v31  ;;  %v2638_v20 = vpop.f32.mrb[47].mxu0 }
 0xaea   :  { %2263 = vst.msk [vmem:[#allocation10 + $0x10] sm:$0xff] %vm101_vm0, %v2257_v17  ;;  %v2258_v44 = vadd.f32 %v2244_v24, %v3850_v27 }
 0xaec   :  { %2264 = vst.msk [vmem:[#allocation10 + $0x18] sm:$0xff] %vm101_vm0, %v2258_v44 }
 0xaed   :  { %v2248_v18 = vpop.f32.mrb[48].mxu0 }
 0xaee   :  { %v2249_v62 = vadd.f32 %v2340_v33, %v2248_v18  ;;  %v2641_v40 = vpop.f32.mrb[49].mxu0 }
 0xaef   :  { %v2251_v42 = vpop.f32.mrb[50].mxu0 }
 0xaf0   :  { %v2259_v22 = vadd.f32 %v2249_v62, %v3859_v7  ;;  %v2252_v23 = vadd.f32 %v2340_v33, %v2251_v42  ;;  %v2642_v34 = vpop.f32.mrb[51].mxu0 }
 0xaf2   :  { %2265 = vst.msk [vmem:[#allocation10 + $0x20] sm:$0xff] %vm101_vm0, %v2259_v22  ;;  %v2260_v35 = vadd.f32 %v2252_v23, %v3864_v46 }
 0xaf4   :  { %2266 = vst.msk [vmem:[#allocation10 + $0x28] sm:$0xff] %vm101_vm0, %v2260_v35 }
 0xaf5   :  { %3009 = shalt.err (!%p3006_p8)
}
 0xaf6   :  { %s3010_s0 = scalar_lea.hbm %s3985_s13, 768 }
 0xaf7   :  { %p3011_p9 = scmp.ne.s32.totalorder %s3985_s13, %s3010_s0  ;;  %p3014_p10 = scmp.lt.u32.totalorder %s3010_s0, %s3985_s13 }
 0xaf9   :  { %p3016_p11 = pnand %p3014_p10, %p3011_p9 }
 0xafb   :  { %3019 = shalt.err (!%p3016_p11)
}
 0xafc   :  { %s3043_s7 = smov 128  }
 0xafd   :  { %2278 = dma.vmem_to_hbm [thread:$0]  %s2273_s19, 768, %s3985_s13, [#allocation4], %s3043_s7, %s3043_s7, %s3039_s25  }
 0xafe   :  { %3026 = dma.done.wait [#allocation4], 768  }
 0xaff   :  { %3027 = vsyncadd [#allocation4], 4294966528 }
 0xb00   :  { %2282 = vsyncpa [#allocation3], 1 }
 0xb01   :  { %2283 = vsyncpa [#allocation6], 1 }
 0xb02   :  { %2284 = vsyncpa [#allocation9], 1 }
 0xb03   :  { %2285 = vsyncpa [#allocation4], 1 }

</bundles_post_ra>
